<compile_context>
chip_gen: v6e
topology: v6e:2x2x1
jax: 0.10.0
libtpu: 0.0.40
codegen_flags: <defaults>
</compile_context>

<pallas_src>
import jax
import jax.numpy as jnp
import numpy as np
from jax.experimental import pallas as pl
from jax.experimental.pallas import tpu as pltpu

# ----------------------------- configuration --------------------------------
B = 2            # batch
IN_FRAMES = 8    # config.data.dataset_config.in_frames
OUT_FRAMES = 8   # config.data.dataset_config.out_frames
C = 4            # UNetParams.channels
H = W = 16
T_STEPS = 16     # num_timesteps
MAX_VAR = 1.0    # max_var
MT_TYPE = "linear"   # per_frame == False

HW = H * W                   # 256 spatial
CHW = C * HW                 # 1024 lanes per frame row
N_ELEMS = B * OUT_FRAMES * CHW
CTX_SCALE = 0.1              # stand-in conditioning strength


# ----------------------------- schedule (glue) -------------------------------
def register_schedule(T, max_var):
    m_t = np.linspace(0.001, 0.999, T)                 # mt_type == 'linear'
    variance_t = 2.0 * (m_t - m_t ** 2) * max_var
    return jnp.asarray(m_t, jnp.float32), jnp.asarray(variance_t, jnp.float32)


M_T_SCHED, VAR_T_SCHED = register_schedule(T_STEPS, MAX_VAR)


# ------------------------------- fused kernel --------------------------------
def fused_bb_kernel(m_ref, s_ref, te_ref, wc_ref, wf_ref,
                    x_ref, y_ref, n_ref,
                    x0rec_ref, recloss_ref, predloss_ref):
    """Fused cond-stage + q_sample + denoise + losses + x0_recon.

    Shapes (per ref):
      m_ref, s_ref : (B,)                 SMEM   per-batch m_t, sigma_t
      te_ref       : (B, C)               SMEM   timestep-embedding scalars
      wc_ref       : (C, C)               SMEM   denoise channel-mix weights
      wf_ref       : (OUT_FRAMES, IN_F)   VMEM   cond frame-mix weights
      x_ref        : (B, OUT_FRAMES, CHW) VMEM   x0   ('b t c h w' flattened)
      y_ref        : (B, IN_FRAMES, CHW)  VMEM   y
      n_ref        : (B, OUT_FRAMES, CHW) VMEM   noise
      x0rec_ref    : (B, OUT_FRAMES, CHW) VMEM   x0_recon output
      recloss_ref, predloss_ref : (1, 1)  SMEM   scalar losses
    """
    wf = wf_ref[...]                                   # (OUT_FRAMES, IN_FRAMES)
    rec_acc = jnp.float32(0.0)
    pred_acc = jnp.float32(0.0)
    inv_fhw = jnp.float32(1.0 / (OUT_FRAMES * HW))

    for b in range(B):                                 # B=2, statically unrolled
        x0 = x_ref[b]                                  # (OUT_FRAMES, CHW)
        yb = y_ref[b]                                  # (IN_FRAMES, CHW)
        nz = n_ref[b]                                  # (OUT_FRAMES, CHW)
        m = m_ref[b]                                   # scalar
        s = s_ref[b]                                   # scalar

        # --- cond_stage_model stand-in: frame mixing, pure VPU outer-products.
        # TODO(synk): real `Determinisitic` predictor architecture is external.
        pred = wf[:, 0:1] * yb[0:1, :]                 # (OUT_FRAMES, CHW)
        for k in range(1, IN_FRAMES):
            pred = pred + wf[:, k:k + 1] * yb[k:k + 1, :]
        dp = pred - x0                                 # pred_loss = mse(pred, x0)
        pred_acc = pred_acc + jnp.sum(dp * dp)

        # --- q_sample (Brownian bridge), common subexpression shared.
        # objective = m*(y-x0) + s*n ;  x_t = x0 + objective  (== (1-m)x0+my+sn)
        y_last = yb[IN_FRAMES - 1:IN_FRAMES, :]        # tile of y[:, :, -1:]
        objective = m * (y_last - x0) + s * nz         # (OUT_FRAMES, CHW)
        x_t = x0 + objective

        # --- denoise_fn stand-in + recloss + x0_recon, per channel lane-slab.
        # TODO(synk): real Unet3D is external; stand-in = 1x1x1 channel mix
        # + timestep embedding + context (spatial/frame mean of pred).
        for c in range(C):
            sl = slice(c * HW, (c + 1) * HW)
            ctx_c = jnp.sum(pred[:, sl]) * inv_fhw     # context stand-in scalar
            blk = wc_ref[c, 0] * x_t[:, 0:HW]
            for k in range(1, C):
                blk = blk + wc_ref[c, k] * x_t[:, k * HW:(k + 1) * HW]
            obj_rec = blk + te_ref[b, c] + jnp.float32(CTX_SCALE) * ctx_c

            d = objective[:, sl] - obj_rec             # recloss = mse(obj, obj_rec)
            rec_acc = rec_acc + jnp.sum(d * d)
            # predict_x0_from_objective: x0_recon = x_t - objective_recon
            x0rec_ref[b, :, sl] = x_t[:, sl] - obj_rec

    inv_n = jnp.float32(1.0 / N_ELEMS)
    recloss_ref[0, 0] = rec_acc * inv_n
    predloss_ref[0, 0] = pred_acc * inv_n


def _fused_call(m_vals, sigma_vals, t_emb, w_chan, w_frames, x_f, y_f, n_f):
    smem = pl.BlockSpec(memory_space=pltpu.MemorySpace.SMEM)
    vmem = pl.BlockSpec(memory_space=pltpu.MemorySpace.VMEM)
    return pl.pallas_call(
        fused_bb_kernel,
        in_specs=[smem, smem, smem, smem,      # m, sigma, t_emb, w_chan
                  vmem, vmem, vmem, vmem],     # w_frames, x, y, noise
        out_specs=(vmem, smem, smem),
        out_shape=(jax.ShapeDtypeStruct((B, OUT_FRAMES, CHW), jnp.float32),
                   jax.ShapeDtypeStruct((1, 1), jnp.float32),
                   jax.ShapeDtypeStruct((1, 1), jnp.float32)),
    )(m_vals, sigma_vals, t_emb, w_chan, w_frames, x_f, y_f, n_f)


# ------------------------------ model forward ---------------------------------
def time_embedding(t, freq):
    # deterministic stand-in timestep embedding: (B, C) scalars (goes to SMEM)
    return jnp.sin(t[:, None].astype(jnp.float32) * freq[None, :])


def p_losses(x, y, t, noise, params):
    """x: (B, OUT_FRAMES, C, H, W), y: (B, IN_FRAMES, C, H, W)  ('b t c h w')."""
    m_vals = M_T_SCHED[t]                        # (B,)   per_frame == False
    sigma_vals = jnp.sqrt(VAR_T_SCHED[t])        # (B,)
    t_emb = time_embedding(t, params["freq"])    # (B, C)

    # keep native 'b t c h w' order; just flatten (c h w) onto lanes
    x_f = x.reshape(B, OUT_FRAMES, CHW)
    y_f = y.reshape(B, IN_FRAMES, CHW)
    n_f = noise.reshape(B, OUT_FRAMES, CHW)

    x0_recon_f, recloss, pred_loss = _fused_call(
        m_vals, sigma_vals, t_emb, params["w_chan"], params["w_frames"],
        x_f, y_f, n_f)

    recloss = recloss[0, 0]
    pred_loss = pred_loss[0, 0]
    # module returns x0_recon in 'b c t h w' layout
    x0_recon = jnp.transpose(
        x0_recon_f.reshape(B, OUT_FRAMES, C, H, W), (0, 2, 1, 3, 4))
    log_dict = {"loss": recloss, "x0_recon": x0_recon}
    return recloss, log_dict, pred_loss


def forward(x, y, params, key):
    """x: (B, OUT_FRAMES, C, H, W), y: (B, IN_FRAMES, C, H, W)  ('b t c h w')."""
    key_t, key_noise = jax.random.split(key)
    t = jax.random.randint(key_t, (B,), 0, T_STEPS)
    noise = jax.random.normal(key_noise, x.shape, jnp.float32)
    return p_losses(x, y, t, noise, params)


forward_jit = jax.jit(forward)


# ------------------------------ pure-JAX reference -----------------------------
def reference_forward(x, y, params, t, noise):
    x_f = x.reshape(B, OUT_FRAMES, CHW).astype(jnp.float32)
    y_f = y.reshape(B, IN_FRAMES, CHW).astype(jnp.float32)
    n_f = noise.reshape(B, OUT_FRAMES, CHW)
    m = M_T_SCHED[t][:, None, None]
    s = jnp.sqrt(VAR_T_SCHED[t])[:, None, None]
    te = time_embedding(t, params["freq"])                        # (B, C)

    pred = jnp.einsum("fk,bkd->bfd", params["w_frames"], y_f)     # (B, F, CHW)
    y_last = y_f[:, IN_FRAMES - 1:IN_FRAMES, :]
    objective = m * (y_last - x_f) + s * n_f
    x_t = x_f + objective

    xt_c = x_t.reshape(B, OUT_FRAMES, C, HW)
    mix = jnp.einsum("ck,bfkh->bfch", params["w_chan"], xt_c)
    ctx = jnp.mean(pred.reshape(B, OUT_FRAMES, C, HW), axis=(1, 3))  # (B, C)
    obj_rec = (mix + te[:, None, :, None]
               + CTX_SCALE * ctx[:, None, :, None]).reshape(B, OUT_FRAMES, CHW)

    recloss = jnp.mean((objective - obj_rec) ** 2)
    pred_loss = jnp.mean((pred - x_f) ** 2)
    x0_recon = jnp.transpose(
        (x_t - obj_rec).reshape(B, OUT_FRAMES, C, H, W), (0, 2, 1, 3, 4))
    return recloss, pred_loss, x0_recon


# ----------------------------------- init --------------------------------------
def init_params():
    # deterministic, in-script parameter init (synthetic; no checkpoint load)
    k1, k2 = jax.random.split(jax.random.PRNGKey(42))
    return {
        "w_chan": jnp.eye(C, dtype=jnp.float32)
                  + 0.01 * jax.random.normal(k1, (C, C), jnp.float32),
        "w_frames": 0.1 * jax.random.normal(k2, (OUT_FRAMES, IN_FRAMES), jnp.float32),
        "freq": jnp.exp(-jnp.arange(C, dtype=jnp.float32)),
    }


if __name__ == "__main__":
    params = init_params()
    key = jax.random.PRNGKey(0)
    kx, ky, kfwd = jax.random.split(key, 3)
    x = jax.random.normal(kx, (B, OUT_FRAMES, C, H, W), jnp.float32)
    y = jax.random.normal(ky, (B, IN_FRAMES, C, H, W), jnp.float32)

    recloss, log_dict, pred_loss = forward_jit(x, y, params, kfwd)
    jax.block_until_ready((recloss, pred_loss, log_dict["x0_recon"]))

    assert recloss.shape == () and pred_loss.shape == ()
    assert log_dict["x0_recon"].shape == (B, C, OUT_FRAMES, H, W)

    # correctness check against a pure-JAX reference of the same forward pass
    key_t, key_noise = jax.random.split(kfwd)
    t_ref = jax.random.randint(key_t, (B,), 0, T_STEPS)
    noise_ref = jax.random.normal(key_noise, x.shape, jnp.float32)
    r_rec, r_pred, r_x0 = reference_forward(x, y, params, t_ref, noise_ref)
    np.testing.assert_allclose(np.asarray(recloss), np.asarray(r_rec),
                               rtol=1e-3, atol=1e-3)
    np.testing.assert_allclose(np.asarray(pred_loss), np.asarray(r_pred),
                               rtol=1e-3, atol=1e-3)
    np.testing.assert_allclose(np.asarray(log_dict["x0_recon"]),
                               np.asarray(r_x0), rtol=1e-3, atol=1e-3)

    print("KERNEL_OK")
</pallas_src>

<mosaic_0001>
module attributes {stable_mosaic.version = 11 : i64} {
  func.func @fused_bb_kernel(%arg0: memref<2xf32, #tpu.memory_space<smem>>, %arg1: memref<2xf32, #tpu.memory_space<smem>>, %arg2: memref<2x4xf32, #tpu.memory_space<smem>>, %arg3: memref<4x4xf32, #tpu.memory_space<smem>>, %arg4: memref<8x8xf32, #tpu.memory_space<vmem>>, %arg5: memref<2x8x1024xf32, #tpu.memory_space<vmem>>, %arg6: memref<2x8x1024xf32, #tpu.memory_space<vmem>>, %arg7: memref<2x8x1024xf32, #tpu.memory_space<vmem>>, %arg8: memref<2x8x1024xf32, #tpu.memory_space<vmem>>, %arg9: memref<1x1xf32, #tpu.memory_space<smem>>, %arg10: memref<1x1xf32, #tpu.memory_space<smem>>) attributes {dimension_semantics = [], scalar_prefetch = 0 : i64, scratch_operands = 0 : i64, tpu.core_type = #tpu.core_type<tc>} {
    %c0 = arith.constant 0 : index
    %c0_0 = arith.constant 0 : index
    %0 = vector.load %arg4[%c0, %c0_0] : memref<8x8xf32, #tpu.memory_space<vmem>>, vector<8x8xf32>
    %c0_1 = arith.constant 0 : index
    %c0_2 = arith.constant 0 : index
    %c0_3 = arith.constant 0 : index
    %1 = vector.load %arg5[%c0_1, %c0_2, %c0_3] : memref<2x8x1024xf32, #tpu.memory_space<vmem>>, vector<1x8x1024xf32>
    %2 = vector.shape_cast %1 : vector<1x8x1024xf32> to vector<8x1024xf32>
    %c0_4 = arith.constant 0 : index
    %c0_5 = arith.constant 0 : index
    %c0_6 = arith.constant 0 : index
    %3 = vector.load %arg6[%c0_4, %c0_5, %c0_6] : memref<2x8x1024xf32, #tpu.memory_space<vmem>>, vector<1x8x1024xf32>
    %4 = vector.shape_cast %3 : vector<1x8x1024xf32> to vector<8x1024xf32>
    %c0_7 = arith.constant 0 : index
    %c0_8 = arith.constant 0 : index
    %c0_9 = arith.constant 0 : index
    %5 = vector.load %arg7[%c0_7, %c0_8, %c0_9] : memref<2x8x1024xf32, #tpu.memory_space<vmem>>, vector<1x8x1024xf32>
    %6 = vector.shape_cast %5 : vector<1x8x1024xf32> to vector<8x1024xf32>
    %c0_10 = arith.constant 0 : index
    %7 = memref.load %arg0[%c0_10] : memref<2xf32, #tpu.memory_space<smem>>
    %c0_11 = arith.constant 0 : index
    %8 = memref.load %arg1[%c0_11] : memref<2xf32, #tpu.memory_space<smem>>
    %9 = vector.extract_strided_slice %0 {offsets = [0, 0], sizes = [8, 1], strides = [1, 1]} : vector<8x8xf32> to vector<8x1xf32>
    %10 = vector.extract_strided_slice %4 {offsets = [0, 0], sizes = [1, 1024], strides = [1, 1]} : vector<8x1024xf32> to vector<1x1024xf32>
    %11 = vector.broadcast %9 : vector<8x1xf32> to vector<8x1024xf32>
    %12 = vector.broadcast %10 : vector<1x1024xf32> to vector<8x1024xf32>
    %13 = arith.mulf %11, %12 : vector<8x1024xf32>
    %14 = vector.extract_strided_slice %0 {offsets = [0, 1], sizes = [8, 1], strides = [1, 1]} : vector<8x8xf32> to vector<8x1xf32>
    %15 = vector.extract_strided_slice %4 {offsets = [1, 0], sizes = [1, 1024], strides = [1, 1]} : vector<8x1024xf32> to vector<1x1024xf32>
    %16 = vector.broadcast %14 : vector<8x1xf32> to vector<8x1024xf32>
    %17 = vector.broadcast %15 : vector<1x1024xf32> to vector<8x1024xf32>
    %18 = arith.mulf %16, %17 : vector<8x1024xf32>
    %19 = arith.addf %13, %18 : vector<8x1024xf32>
    %20 = vector.extract_strided_slice %0 {offsets = [0, 2], sizes = [8, 1], strides = [1, 1]} : vector<8x8xf32> to vector<8x1xf32>
    %21 = vector.extract_strided_slice %4 {offsets = [2, 0], sizes = [1, 1024], strides = [1, 1]} : vector<8x1024xf32> to vector<1x1024xf32>
    %22 = vector.broadcast %20 : vector<8x1xf32> to vector<8x1024xf32>
    %23 = vector.broadcast %21 : vector<1x1024xf32> to vector<8x1024xf32>
    %24 = arith.mulf %22, %23 : vector<8x1024xf32>
    %25 = arith.addf %19, %24 : vector<8x1024xf32>
    %26 = vector.extract_strided_slice %0 {offsets = [0, 3], sizes = [8, 1], strides = [1, 1]} : vector<8x8xf32> to vector<8x1xf32>
    %27 = vector.extract_strided_slice %4 {offsets = [3, 0], sizes = [1, 1024], strides = [1, 1]} : vector<8x1024xf32> to vector<1x1024xf32>
    %28 = vector.broadcast %26 : vector<8x1xf32> to vector<8x1024xf32>
    %29 = vector.broadcast %27 : vector<1x1024xf32> to vector<8x1024xf32>
    %30 = arith.mulf %28, %29 : vector<8x1024xf32>
    %31 = arith.addf %25, %30 : vector<8x1024xf32>
    %32 = vector.extract_strided_slice %0 {offsets = [0, 4], sizes = [8, 1], strides = [1, 1]} : vector<8x8xf32> to vector<8x1xf32>
    %33 = vector.extract_strided_slice %4 {offsets = [4, 0], sizes = [1, 1024], strides = [1, 1]} : vector<8x1024xf32> to vector<1x1024xf32>
    %34 = vector.broadcast %32 : vector<8x1xf32> to vector<8x1024xf32>
    %35 = vector.broadcast %33 : vector<1x1024xf32> to vector<8x1024xf32>
    %36 = arith.mulf %34, %35 : vector<8x1024xf32>
    %37 = arith.addf %31, %36 : vector<8x1024xf32>
    %38 = vector.extract_strided_slice %0 {offsets = [0, 5], sizes = [8, 1], strides = [1, 1]} : vector<8x8xf32> to vector<8x1xf32>
    %39 = vector.extract_strided_slice %4 {offsets = [5, 0], sizes = [1, 1024], strides = [1, 1]} : vector<8x1024xf32> to vector<1x1024xf32>
    %40 = vector.broadcast %38 : vector<8x1xf32> to vector<8x1024xf32>
    %41 = vector.broadcast %39 : vector<1x1024xf32> to vector<8x1024xf32>
    %42 = arith.mulf %40, %41 : vector<8x1024xf32>
    %43 = arith.addf %37, %42 : vector<8x1024xf32>
    %44 = vector.extract_strided_slice %0 {offsets = [0, 6], sizes = [8, 1], strides = [1, 1]} : vector<8x8xf32> to vector<8x1xf32>
    %45 = vector.extract_strided_slice %4 {offsets = [6, 0], sizes = [1, 1024], strides = [1, 1]} : vector<8x1024xf32> to vector<1x1024xf32>
    %46 = vector.broadcast %44 : vector<8x1xf32> to vector<8x1024xf32>
    %47 = vector.broadcast %45 : vector<1x1024xf32> to vector<8x1024xf32>
    %48 = arith.mulf %46, %47 : vector<8x1024xf32>
    %49 = arith.addf %43, %48 : vector<8x1024xf32>
    %50 = vector.extract_strided_slice %0 {offsets = [0, 7], sizes = [8, 1], strides = [1, 1]} : vector<8x8xf32> to vector<8x1xf32>
    %51 = vector.extract_strided_slice %4 {offsets = [7, 0], sizes = [1, 1024], strides = [1, 1]} : vector<8x1024xf32> to vector<1x1024xf32>
    %52 = vector.broadcast %50 : vector<8x1xf32> to vector<8x1024xf32>
    %53 = vector.broadcast %51 : vector<1x1024xf32> to vector<8x1024xf32>
    %54 = arith.mulf %52, %53 : vector<8x1024xf32>
    %55 = arith.addf %49, %54 : vector<8x1024xf32>
    %56 = arith.subf %55, %2 : vector<8x1024xf32>
    %57 = arith.mulf %56, %56 : vector<8x1024xf32>
    %58 = vector.shape_cast %57 : vector<8x1024xf32> to vector<1x8x1024xf32>
    %cst = arith.constant dense<0.000000e+00> : vector<1xf32>
    %59 = vector.multi_reduction <add>, %58, %cst [1, 2] : vector<1x8x1024xf32> to vector<1xf32>
    %60 = vector.shape_cast %59 : vector<1xf32> to vector<1x1x1xf32>
    %61 = vector.extract %60[0, 0, 0] : f32 from vector<1x1x1xf32>
    %cst_12 = arith.constant 0.000000e+00 : f32
    %62 = arith.addf %cst_12, %61 : f32
    %63 = vector.extract_strided_slice %4 {offsets = [7, 0], sizes = [1, 1024], strides = [1, 1]} : vector<8x1024xf32> to vector<1x1024xf32>
    %64 = vector.broadcast %63 : vector<1x1024xf32> to vector<8x1024xf32>
    %65 = arith.subf %64, %2 : vector<8x1024xf32>
    %66 = vector.broadcast %7 : f32 to vector<8x1024xf32>
    %67 = arith.mulf %66, %65 : vector<8x1024xf32>
    %68 = vector.broadcast %8 : f32 to vector<8x1024xf32>
    %69 = arith.mulf %68, %6 : vector<8x1024xf32>
    %70 = arith.addf %67, %69 : vector<8x1024xf32>
    %71 = arith.addf %2, %70 : vector<8x1024xf32>
    %72 = vector.extract_strided_slice %55 {offsets = [0, 0], sizes = [8, 256], strides = [1, 1]} : vector<8x1024xf32> to vector<8x256xf32>
    %73 = vector.shape_cast %72 : vector<8x256xf32> to vector<1x8x256xf32>
    %cst_13 = arith.constant dense<0.000000e+00> : vector<1xf32>
    %74 = vector.multi_reduction <add>, %73, %cst_13 [1, 2] : vector<1x8x256xf32> to vector<1xf32>
    %75 = vector.shape_cast %74 : vector<1xf32> to vector<1x1x1xf32>
    %76 = vector.extract %75[0, 0, 0] : f32 from vector<1x1x1xf32>
    %cst_14 = arith.constant 4.8828125E-4 : f32
    %77 = arith.mulf %76, %cst_14 : f32
    %c0_15 = arith.constant 0 : index
    %c0_16 = arith.constant 0 : index
    %78 = memref.load %arg3[%c0_15, %c0_16] : memref<4x4xf32, #tpu.memory_space<smem>>
    %79 = vector.extract_strided_slice %71 {offsets = [0, 0], sizes = [8, 256], strides = [1, 1]} : vector<8x1024xf32> to vector<8x256xf32>
    %80 = vector.broadcast %78 : f32 to vector<8x256xf32>
    %81 = arith.mulf %80, %79 : vector<8x256xf32>
    %c0_17 = arith.constant 0 : index
    %c1 = arith.constant 1 : index
    %82 = memref.load %arg3[%c0_17, %c1] : memref<4x4xf32, #tpu.memory_space<smem>>
    %83 = vector.extract_strided_slice %71 {offsets = [0, 256], sizes = [8, 256], strides = [1, 1]} : vector<8x1024xf32> to vector<8x256xf32>
    %84 = vector.broadcast %82 : f32 to vector<8x256xf32>
    %85 = arith.mulf %84, %83 : vector<8x256xf32>
    %86 = arith.addf %81, %85 : vector<8x256xf32>
    %c0_18 = arith.constant 0 : index
    %c2 = arith.constant 2 : index
    %87 = memref.load %arg3[%c0_18, %c2] : memref<4x4xf32, #tpu.memory_space<smem>>
    %88 = vector.extract_strided_slice %71 {offsets = [0, 512], sizes = [8, 256], strides = [1, 1]} : vector<8x1024xf32> to vector<8x256xf32>
    %89 = vector.broadcast %87 : f32 to vector<8x256xf32>
    %90 = arith.mulf %89, %88 : vector<8x256xf32>
    %91 = arith.addf %86, %90 : vector<8x256xf32>
    %c0_19 = arith.constant 0 : index
    %c3 = arith.constant 3 : index
    %92 = memref.load %arg3[%c0_19, %c3] : memref<4x4xf32, #tpu.memory_space<smem>>
    %93 = vector.extract_strided_slice %71 {offsets = [0, 768], sizes = [8, 256], strides = [1, 1]} : vector<8x1024xf32> to vector<8x256xf32>
    %94 = vector.broadcast %92 : f32 to vector<8x256xf32>
    %95 = arith.mulf %94, %93 : vector<8x256xf32>
    %96 = arith.addf %91, %95 : vector<8x256xf32>
    %c0_20 = arith.constant 0 : index
    %c0_21 = arith.constant 0 : index
    %97 = memref.load %arg2[%c0_20, %c0_21] : memref<2x4xf32, #tpu.memory_space<smem>>
    %98 = vector.broadcast %97 : f32 to vector<8x256xf32>
    %99 = arith.addf %96, %98 : vector<8x256xf32>
    %cst_22 = arith.constant 1.000000e-01 : f32
    %100 = arith.mulf %cst_22, %77 : f32
    %101 = vector.broadcast %100 : f32 to vector<8x256xf32>
    %102 = arith.addf %99, %101 : vector<8x256xf32>
    %103 = vector.extract_strided_slice %70 {offsets = [0, 0], sizes = [8, 256], strides = [1, 1]} : vector<8x1024xf32> to vector<8x256xf32>
    %104 = arith.subf %103, %102 : vector<8x256xf32>
    %105 = arith.mulf %104, %104 : vector<8x256xf32>
    %106 = vector.shape_cast %105 : vector<8x256xf32> to vector<1x8x256xf32>
    %cst_23 = arith.constant dense<0.000000e+00> : vector<1xf32>
    %107 = vector.multi_reduction <add>, %106, %cst_23 [1, 2] : vector<1x8x256xf32> to vector<1xf32>
    %108 = vector.shape_cast %107 : vector<1xf32> to vector<1x1x1xf32>
    %109 = vector.extract %108[0, 0, 0] : f32 from vector<1x1x1xf32>
    %cst_24 = arith.constant 0.000000e+00 : f32
    %110 = arith.addf %cst_24, %109 : f32
    %111 = vector.extract_strided_slice %71 {offsets = [0, 0], sizes = [8, 256], strides = [1, 1]} : vector<8x1024xf32> to vector<8x256xf32>
    %112 = arith.subf %111, %102 : vector<8x256xf32>
    %c0_25 = arith.constant 0 : index
    %c0_26 = arith.constant 0 : index
    %c0_27 = arith.constant 0 : index
    %113 = vector.load %arg8[%c0_25, %c0_26, %c0_27] : memref<2x8x1024xf32, #tpu.memory_space<vmem>>, vector<1x8x256xf32>
    %114 = vector.shape_cast %113 : vector<1x8x256xf32> to vector<8x256xf32>
    %115 = vector.shape_cast %112 : vector<8x256xf32> to vector<1x8x256xf32>
    tpu.vector_store %arg8[%c0_25, %c0_26, %c0_27], %115 {strides = array<i32>} : memref<2x8x1024xf32, #tpu.memory_space<vmem>>, vector<1x8x256xf32>,
    %116 = vector.extract_strided_slice %55 {offsets = [0, 256], sizes = [8, 256], strides = [1, 1]} : vector<8x1024xf32> to vector<8x256xf32>
    %117 = vector.shape_cast %116 : vector<8x256xf32> to vector<1x8x256xf32>
    %cst_28 = arith.constant dense<0.000000e+00> : vector<1xf32>
    %118 = vector.multi_reduction <add>, %117, %cst_28 [1, 2] : vector<1x8x256xf32> to vector<1xf32>
    %119 = vector.shape_cast %118 : vector<1xf32> to vector<1x1x1xf32>
    %120 = vector.extract %119[0, 0, 0] : f32 from vector<1x1x1xf32>
    %cst_29 = arith.constant 4.8828125E-4 : f32
    %121 = arith.mulf %120, %cst_29 : f32
    %c1_30 = arith.constant 1 : index
    %c0_31 = arith.constant 0 : index
    %122 = memref.load %arg3[%c1_30, %c0_31] : memref<4x4xf32, #tpu.memory_space<smem>>
    %123 = vector.extract_strided_slice %71 {offsets = [0, 0], sizes = [8, 256], strides = [1, 1]} : vector<8x1024xf32> to vector<8x256xf32>
    %124 = vector.broadcast %122 : f32 to vector<8x256xf32>
    %125 = arith.mulf %124, %123 : vector<8x256xf32>
    %c1_32 = arith.constant 1 : index
    %c1_33 = arith.constant 1 : index
    %126 = memref.load %arg3[%c1_32, %c1_33] : memref<4x4xf32, #tpu.memory_space<smem>>
    %127 = vector.extract_strided_slice %71 {offsets = [0, 256], sizes = [8, 256], strides = [1, 1]} : vector<8x1024xf32> to vector<8x256xf32>
    %128 = vector.broadcast %126 : f32 to vector<8x256xf32>
    %129 = arith.mulf %128, %127 : vector<8x256xf32>
    %130 = arith.addf %125, %129 : vector<8x256xf32>
    %c1_34 = arith.constant 1 : index
    %c2_35 = arith.constant 2 : index
    %131 = memref.load %arg3[%c1_34, %c2_35] : memref<4x4xf32, #tpu.memory_space<smem>>
    %132 = vector.extract_strided_slice %71 {offsets = [0, 512], sizes = [8, 256], strides = [1, 1]} : vector<8x1024xf32> to vector<8x256xf32>
    %133 = vector.broadcast %131 : f32 to vector<8x256xf32>
    %134 = arith.mulf %133, %132 : vector<8x256xf32>
    %135 = arith.addf %130, %134 : vector<8x256xf32>
    %c1_36 = arith.constant 1 : index
    %c3_37 = arith.constant 3 : index
    %136 = memref.load %arg3[%c1_36, %c3_37] : memref<4x4xf32, #tpu.memory_space<smem>>
    %137 = vector.extract_strided_slice %71 {offsets = [0, 768], sizes = [8, 256], strides = [1, 1]} : vector<8x1024xf32> to vector<8x256xf32>
    %138 = vector.broadcast %136 : f32 to vector<8x256xf32>
    %139 = arith.mulf %138, %137 : vector<8x256xf32>
    %140 = arith.addf %135, %139 : vector<8x256xf32>
    %c0_38 = arith.constant 0 : index
    %c1_39 = arith.constant 1 : index
    %141 = memref.load %arg2[%c0_38, %c1_39] : memref<2x4xf32, #tpu.memory_space<smem>>
    %142 = vector.broadcast %141 : f32 to vector<8x256xf32>
    %143 = arith.addf %140, %142 : vector<8x256xf32>
    %cst_40 = arith.constant 1.000000e-01 : f32
    %144 = arith.mulf %cst_40, %121 : f32
    %145 = vector.broadcast %144 : f32 to vector<8x256xf32>
    %146 = arith.addf %143, %145 : vector<8x256xf32>
    %147 = vector.extract_strided_slice %70 {offsets = [0, 256], sizes = [8, 256], strides = [1, 1]} : vector<8x1024xf32> to vector<8x256xf32>
    %148 = arith.subf %147, %146 : vector<8x256xf32>
    %149 = arith.mulf %148, %148 : vector<8x256xf32>
    %150 = vector.shape_cast %149 : vector<8x256xf32> to vector<1x8x256xf32>
    %cst_41 = arith.constant dense<0.000000e+00> : vector<1xf32>
    %151 = vector.multi_reduction <add>, %150, %cst_41 [1, 2] : vector<1x8x256xf32> to vector<1xf32>
    %152 = vector.shape_cast %151 : vector<1xf32> to vector<1x1x1xf32>
    %153 = vector.extract %152[0, 0, 0] : f32 from vector<1x1x1xf32>
    %154 = arith.addf %110, %153 : f32
    %155 = vector.extract_strided_slice %71 {offsets = [0, 256], sizes = [8, 256], strides = [1, 1]} : vector<8x1024xf32> to vector<8x256xf32>
    %156 = arith.subf %155, %146 : vector<8x256xf32>
    %c0_42 = arith.constant 0 : index
    %c0_43 = arith.constant 0 : index
    %c256 = arith.constant 256 : index
    %157 = vector.load %arg8[%c0_42, %c0_43, %c256] : memref<2x8x1024xf32, #tpu.memory_space<vmem>>, vector<1x8x256xf32>
    %158 = vector.shape_cast %157 : vector<1x8x256xf32> to vector<8x256xf32>
    %159 = vector.shape_cast %156 : vector<8x256xf32> to vector<1x8x256xf32>
    tpu.vector_store %arg8[%c0_42, %c0_43, %c256], %159 {strides = array<i32>} : memref<2x8x1024xf32, #tpu.memory_space<vmem>>, vector<1x8x256xf32>,
    %160 = vector.extract_strided_slice %55 {offsets = [0, 512], sizes = [8, 256], strides = [1, 1]} : vector<8x1024xf32> to vector<8x256xf32>
    %161 = vector.shape_cast %160 : vector<8x256xf32> to vector<1x8x256xf32>
    %cst_44 = arith.constant dense<0.000000e+00> : vector<1xf32>
    %162 = vector.multi_reduction <add>, %161, %cst_44 [1, 2] : vector<1x8x256xf32> to vector<1xf32>
    %163 = vector.shape_cast %162 : vector<1xf32> to vector<1x1x1xf32>
    %164 = vector.extract %163[0, 0, 0] : f32 from vector<1x1x1xf32>
    %cst_45 = arith.constant 4.8828125E-4 : f32
    %165 = arith.mulf %164, %cst_45 : f32
    %c2_46 = arith.constant 2 : index
    %c0_47 = arith.constant 0 : index
    %166 = memref.load %arg3[%c2_46, %c0_47] : memref<4x4xf32, #tpu.memory_space<smem>>
    %167 = vector.extract_strided_slice %71 {offsets = [0, 0], sizes = [8, 256], strides = [1, 1]} : vector<8x1024xf32> to vector<8x256xf32>
    %168 = vector.broadcast %166 : f32 to vector<8x256xf32>
    %169 = arith.mulf %168, %167 : vector<8x256xf32>
    %c2_48 = arith.constant 2 : index
    %c1_49 = arith.constant 1 : index
    %170 = memref.load %arg3[%c2_48, %c1_49] : memref<4x4xf32, #tpu.memory_space<smem>>
    %171 = vector.extract_strided_slice %71 {offsets = [0, 256], sizes = [8, 256], strides = [1, 1]} : vector<8x1024xf32> to vector<8x256xf32>
    %172 = vector.broadcast %170 : f32 to vector<8x256xf32>
    %173 = arith.mulf %172, %171 : vector<8x256xf32>
    %174 = arith.addf %169, %173 : vector<8x256xf32>
    %c2_50 = arith.constant 2 : index
    %c2_51 = arith.constant 2 : index
    %175 = memref.load %arg3[%c2_50, %c2_51] : memref<4x4xf32, #tpu.memory_space<smem>>
    %176 = vector.extract_strided_slice %71 {offsets = [0, 512], sizes = [8, 256], strides = [1, 1]} : vector<8x1024xf32> to vector<8x256xf32>
    %177 = vector.broadcast %175 : f32 to vector<8x256xf32>
    %178 = arith.mulf %177, %176 : vector<8x256xf32>
    %179 = arith.addf %174, %178 : vector<8x256xf32>
    %c2_52 = arith.constant 2 : index
    %c3_53 = arith.constant 3 : index
    %180 = memref.load %arg3[%c2_52, %c3_53] : memref<4x4xf32, #tpu.memory_space<smem>>
    %181 = vector.extract_strided_slice %71 {offsets = [0, 768], sizes = [8, 256], strides = [1, 1]} : vector<8x1024xf32> to vector<8x256xf32>
    %182 = vector.broadcast %180 : f32 to vector<8x256xf32>
    %183 = arith.mulf %182, %181 : vector<8x256xf32>
    %184 = arith.addf %179, %183 : vector<8x256xf32>
    %c0_54 = arith.constant 0 : index
    %c2_55 = arith.constant 2 : index
    %185 = memref.load %arg2[%c0_54, %c2_55] : memref<2x4xf32, #tpu.memory_space<smem>>
    %186 = vector.broadcast %185 : f32 to vector<8x256xf32>
    %187 = arith.addf %184, %186 : vector<8x256xf32>
    %cst_56 = arith.constant 1.000000e-01 : f32
    %188 = arith.mulf %cst_56, %165 : f32
    %189 = vector.broadcast %188 : f32 to vector<8x256xf32>
    %190 = arith.addf %187, %189 : vector<8x256xf32>
    %191 = vector.extract_strided_slice %70 {offsets = [0, 512], sizes = [8, 256], strides = [1, 1]} : vector<8x1024xf32> to vector<8x256xf32>
    %192 = arith.subf %191, %190 : vector<8x256xf32>
    %193 = arith.mulf %192, %192 : vector<8x256xf32>
    %194 = vector.shape_cast %193 : vector<8x256xf32> to vector<1x8x256xf32>
    %cst_57 = arith.constant dense<0.000000e+00> : vector<1xf32>
    %195 = vector.multi_reduction <add>, %194, %cst_57 [1, 2] : vector<1x8x256xf32> to vector<1xf32>
    %196 = vector.shape_cast %195 : vector<1xf32> to vector<1x1x1xf32>
    %197 = vector.extract %196[0, 0, 0] : f32 from vector<1x1x1xf32>
    %198 = arith.addf %154, %197 : f32
    %199 = vector.extract_strided_slice %71 {offsets = [0, 512], sizes = [8, 256], strides = [1, 1]} : vector<8x1024xf32> to vector<8x256xf32>
    %200 = arith.subf %199, %190 : vector<8x256xf32>
    %c0_58 = arith.constant 0 : index
    %c0_59 = arith.constant 0 : index
    %c512 = arith.constant 512 : index
    %201 = vector.load %arg8[%c0_58, %c0_59, %c512] : memref<2x8x1024xf32, #tpu.memory_space<vmem>>, vector<1x8x256xf32>
    %202 = vector.shape_cast %201 : vector<1x8x256xf32> to vector<8x256xf32>
    %203 = vector.shape_cast %200 : vector<8x256xf32> to vector<1x8x256xf32>
    tpu.vector_store %arg8[%c0_58, %c0_59, %c512], %203 {strides = array<i32>} : memref<2x8x1024xf32, #tpu.memory_space<vmem>>, vector<1x8x256xf32>,
    %204 = vector.extract_strided_slice %55 {offsets = [0, 768], sizes = [8, 256], strides = [1, 1]} : vector<8x1024xf32> to vector<8x256xf32>
    %205 = vector.shape_cast %204 : vector<8x256xf32> to vector<1x8x256xf32>
    %cst_60 = arith.constant dense<0.000000e+00> : vector<1xf32>
    %206 = vector.multi_reduction <add>, %205, %cst_60 [1, 2] : vector<1x8x256xf32> to vector<1xf32>
    %207 = vector.shape_cast %206 : vector<1xf32> to vector<1x1x1xf32>
    %208 = vector.extract %207[0, 0, 0] : f32 from vector<1x1x1xf32>
    %cst_61 = arith.constant 4.8828125E-4 : f32
    %209 = arith.mulf %208, %cst_61 : f32
    %c3_62 = arith.constant 3 : index
    %c0_63 = arith.constant 0 : index
    %210 = memref.load %arg3[%c3_62, %c0_63] : memref<4x4xf32, #tpu.memory_space<smem>>
    %211 = vector.extract_strided_slice %71 {offsets = [0, 0], sizes = [8, 256], strides = [1, 1]} : vector<8x1024xf32> to vector<8x256xf32>
    %212 = vector.broadcast %210 : f32 to vector<8x256xf32>
    %213 = arith.mulf %212, %211 : vector<8x256xf32>
    %c3_64 = arith.constant 3 : index
    %c1_65 = arith.constant 1 : index
    %214 = memref.load %arg3[%c3_64, %c1_65] : memref<4x4xf32, #tpu.memory_space<smem>>
    %215 = vector.extract_strided_slice %71 {offsets = [0, 256], sizes = [8, 256], strides = [1, 1]} : vector<8x1024xf32> to vector<8x256xf32>
    %216 = vector.broadcast %214 : f32 to vector<8x256xf32>
    %217 = arith.mulf %216, %215 : vector<8x256xf32>
    %218 = arith.addf %213, %217 : vector<8x256xf32>
    %c3_66 = arith.constant 3 : index
    %c2_67 = arith.constant 2 : index
    %219 = memref.load %arg3[%c3_66, %c2_67] : memref<4x4xf32, #tpu.memory_space<smem>>
    %220 = vector.extract_strided_slice %71 {offsets = [0, 512], sizes = [8, 256], strides = [1, 1]} : vector<8x1024xf32> to vector<8x256xf32>
    %221 = vector.broadcast %219 : f32 to vector<8x256xf32>
    %222 = arith.mulf %221, %220 : vector<8x256xf32>
    %223 = arith.addf %218, %222 : vector<8x256xf32>
    %c3_68 = arith.constant 3 : index
    %c3_69 = arith.constant 3 : index
    %224 = memref.load %arg3[%c3_68, %c3_69] : memref<4x4xf32, #tpu.memory_space<smem>>
    %225 = vector.extract_strided_slice %71 {offsets = [0, 768], sizes = [8, 256], strides = [1, 1]} : vector<8x1024xf32> to vector<8x256xf32>
    %226 = vector.broadcast %224 : f32 to vector<8x256xf32>
    %227 = arith.mulf %226, %225 : vector<8x256xf32>
    %228 = arith.addf %223, %227 : vector<8x256xf32>
    %c0_70 = arith.constant 0 : index
    %c3_71 = arith.constant 3 : index
    %229 = memref.load %arg2[%c0_70, %c3_71] : memref<2x4xf32, #tpu.memory_space<smem>>
    %230 = vector.broadcast %229 : f32 to vector<8x256xf32>
    %231 = arith.addf %228, %230 : vector<8x256xf32>
    %cst_72 = arith.constant 1.000000e-01 : f32
    %232 = arith.mulf %cst_72, %209 : f32
    %233 = vector.broadcast %232 : f32 to vector<8x256xf32>
    %234 = arith.addf %231, %233 : vector<8x256xf32>
    %235 = vector.extract_strided_slice %70 {offsets = [0, 768], sizes = [8, 256], strides = [1, 1]} : vector<8x1024xf32> to vector<8x256xf32>
    %236 = arith.subf %235, %234 : vector<8x256xf32>
    %237 = arith.mulf %236, %236 : vector<8x256xf32>
    %238 = vector.shape_cast %237 : vector<8x256xf32> to vector<1x8x256xf32>
    %cst_73 = arith.constant dense<0.000000e+00> : vector<1xf32>
    %239 = vector.multi_reduction <add>, %238, %cst_73 [1, 2] : vector<1x8x256xf32> to vector<1xf32>
    %240 = vector.shape_cast %239 : vector<1xf32> to vector<1x1x1xf32>
    %241 = vector.extract %240[0, 0, 0] : f32 from vector<1x1x1xf32>
    %242 = arith.addf %198, %241 : f32
    %243 = vector.extract_strided_slice %71 {offsets = [0, 768], sizes = [8, 256], strides = [1, 1]} : vector<8x1024xf32> to vector<8x256xf32>
    %244 = arith.subf %243, %234 : vector<8x256xf32>
    %c0_74 = arith.constant 0 : index
    %c0_75 = arith.constant 0 : index
    %c768 = arith.constant 768 : index
    %245 = vector.load %arg8[%c0_74, %c0_75, %c768] : memref<2x8x1024xf32, #tpu.memory_space<vmem>>, vector<1x8x256xf32>
    %246 = vector.shape_cast %245 : vector<1x8x256xf32> to vector<8x256xf32>
    %247 = vector.shape_cast %244 : vector<8x256xf32> to vector<1x8x256xf32>
    tpu.vector_store %arg8[%c0_74, %c0_75, %c768], %247 {strides = array<i32>} : memref<2x8x1024xf32, #tpu.memory_space<vmem>>, vector<1x8x256xf32>,
    %c1_76 = arith.constant 1 : index
    %c0_77 = arith.constant 0 : index
    %c0_78 = arith.constant 0 : index
    %248 = vector.load %arg5[%c1_76, %c0_77, %c0_78] : memref<2x8x1024xf32, #tpu.memory_space<vmem>>, vector<1x8x1024xf32>
    %249 = vector.shape_cast %248 : vector<1x8x1024xf32> to vector<8x1024xf32>
    %c1_79 = arith.constant 1 : index
    %c0_80 = arith.constant 0 : index
    %c0_81 = arith.constant 0 : index
    %250 = vector.load %arg6[%c1_79, %c0_80, %c0_81] : memref<2x8x1024xf32, #tpu.memory_space<vmem>>, vector<1x8x1024xf32>
    %251 = vector.shape_cast %250 : vector<1x8x1024xf32> to vector<8x1024xf32>
    %c1_82 = arith.constant 1 : index
    %c0_83 = arith.constant 0 : index
    %c0_84 = arith.constant 0 : index
    %252 = vector.load %arg7[%c1_82, %c0_83, %c0_84] : memref<2x8x1024xf32, #tpu.memory_space<vmem>>, vector<1x8x1024xf32>
    %253 = vector.shape_cast %252 : vector<1x8x1024xf32> to vector<8x1024xf32>
    %c1_85 = arith.constant 1 : index
    %254 = memref.load %arg0[%c1_85] : memref<2xf32, #tpu.memory_space<smem>>
    %c1_86 = arith.constant 1 : index
    %255 = memref.load %arg1[%c1_86] : memref<2xf32, #tpu.memory_space<smem>>
    %256 = vector.extract_strided_slice %0 {offsets = [0, 0], sizes = [8, 1], strides = [1, 1]} : vector<8x8xf32> to vector<8x1xf32>
    %257 = vector.extract_strided_slice %251 {offsets = [0, 0], sizes = [1, 1024], strides = [1, 1]} : vector<8x1024xf32> to vector<1x1024xf32>
    %258 = vector.broadcast %256 : vector<8x1xf32> to vector<8x1024xf32>
    %259 = vector.broadcast %257 : vector<1x1024xf32> to vector<8x1024xf32>
    %260 = arith.mulf %258, %259 : vector<8x1024xf32>
    %261 = vector.extract_strided_slice %0 {offsets = [0, 1], sizes = [8, 1], strides = [1, 1]} : vector<8x8xf32> to vector<8x1xf32>
    %262 = vector.extract_strided_slice %251 {offsets = [1, 0], sizes = [1, 1024], strides = [1, 1]} : vector<8x1024xf32> to vector<1x1024xf32>
    %263 = vector.broadcast %261 : vector<8x1xf32> to vector<8x1024xf32>
    %264 = vector.broadcast %262 : vector<1x1024xf32> to vector<8x1024xf32>
    %265 = arith.mulf %263, %264 : vector<8x1024xf32>
    %266 = arith.addf %260, %265 : vector<8x1024xf32>
    %267 = vector.extract_strided_slice %0 {offsets = [0, 2], sizes = [8, 1], strides = [1, 1]} : vector<8x8xf32> to vector<8x1xf32>
    %268 = vector.extract_strided_slice %251 {offsets = [2, 0], sizes = [1, 1024], strides = [1, 1]} : vector<8x1024xf32> to vector<1x1024xf32>
    %269 = vector.broadcast %267 : vector<8x1xf32> to vector<8x1024xf32>
    %270 = vector.broadcast %268 : vector<1x1024xf32> to vector<8x1024xf32>
    %271 = arith.mulf %269, %270 : vector<8x1024xf32>
    %272 = arith.addf %266, %271 : vector<8x1024xf32>
    %273 = vector.extract_strided_slice %0 {offsets = [0, 3], sizes = [8, 1], strides = [1, 1]} : vector<8x8xf32> to vector<8x1xf32>
    %274 = vector.extract_strided_slice %251 {offsets = [3, 0], sizes = [1, 1024], strides = [1, 1]} : vector<8x1024xf32> to vector<1x1024xf32>
    %275 = vector.broadcast %273 : vector<8x1xf32> to vector<8x1024xf32>
    %276 = vector.broadcast %274 : vector<1x1024xf32> to vector<8x1024xf32>
    %277 = arith.mulf %275, %276 : vector<8x1024xf32>
    %278 = arith.addf %272, %277 : vector<8x1024xf32>
    %279 = vector.extract_strided_slice %0 {offsets = [0, 4], sizes = [8, 1], strides = [1, 1]} : vector<8x8xf32> to vector<8x1xf32>
    %280 = vector.extract_strided_slice %251 {offsets = [4, 0], sizes = [1, 1024], strides = [1, 1]} : vector<8x1024xf32> to vector<1x1024xf32>
    %281 = vector.broadcast %279 : vector<8x1xf32> to vector<8x1024xf32>
    %282 = vector.broadcast %280 : vector<1x1024xf32> to vector<8x1024xf32>
    %283 = arith.mulf %281, %282 : vector<8x1024xf32>
    %284 = arith.addf %278, %283 : vector<8x1024xf32>
    %285 = vector.extract_strided_slice %0 {offsets = [0, 5], sizes = [8, 1], strides = [1, 1]} : vector<8x8xf32> to vector<8x1xf32>
    %286 = vector.extract_strided_slice %251 {offsets = [5, 0], sizes = [1, 1024], strides = [1, 1]} : vector<8x1024xf32> to vector<1x1024xf32>
    %287 = vector.broadcast %285 : vector<8x1xf32> to vector<8x1024xf32>
    %288 = vector.broadcast %286 : vector<1x1024xf32> to vector<8x1024xf32>
    %289 = arith.mulf %287, %288 : vector<8x1024xf32>
    %290 = arith.addf %284, %289 : vector<8x1024xf32>
    %291 = vector.extract_strided_slice %0 {offsets = [0, 6], sizes = [8, 1], strides = [1, 1]} : vector<8x8xf32> to vector<8x1xf32>
    %292 = vector.extract_strided_slice %251 {offsets = [6, 0], sizes = [1, 1024], strides = [1, 1]} : vector<8x1024xf32> to vector<1x1024xf32>
    %293 = vector.broadcast %291 : vector<8x1xf32> to vector<8x1024xf32>
    %294 = vector.broadcast %292 : vector<1x1024xf32> to vector<8x1024xf32>
    %295 = arith.mulf %293, %294 : vector<8x1024xf32>
    %296 = arith.addf %290, %295 : vector<8x1024xf32>
    %297 = vector.extract_strided_slice %0 {offsets = [0, 7], sizes = [8, 1], strides = [1, 1]} : vector<8x8xf32> to vector<8x1xf32>
    %298 = vector.extract_strided_slice %251 {offsets = [7, 0], sizes = [1, 1024], strides = [1, 1]} : vector<8x1024xf32> to vector<1x1024xf32>
    %299 = vector.broadcast %297 : vector<8x1xf32> to vector<8x1024xf32>
    %300 = vector.broadcast %298 : vector<1x1024xf32> to vector<8x1024xf32>
    %301 = arith.mulf %299, %300 : vector<8x1024xf32>
    %302 = arith.addf %296, %301 : vector<8x1024xf32>
    %303 = arith.subf %302, %249 : vector<8x1024xf32>
    %304 = arith.mulf %303, %303 : vector<8x1024xf32>
    %305 = vector.shape_cast %304 : vector<8x1024xf32> to vector<1x8x1024xf32>
    %cst_87 = arith.constant dense<0.000000e+00> : vector<1xf32>
    %306 = vector.multi_reduction <add>, %305, %cst_87 [1, 2] : vector<1x8x1024xf32> to vector<1xf32>
    %307 = vector.shape_cast %306 : vector<1xf32> to vector<1x1x1xf32>
    %308 = vector.extract %307[0, 0, 0] : f32 from vector<1x1x1xf32>
    %309 = arith.addf %62, %308 : f32
    %310 = vector.extract_strided_slice %251 {offsets = [7, 0], sizes = [1, 1024], strides = [1, 1]} : vector<8x1024xf32> to vector<1x1024xf32>
    %311 = vector.broadcast %310 : vector<1x1024xf32> to vector<8x1024xf32>
    %312 = arith.subf %311, %249 : vector<8x1024xf32>
    %313 = vector.broadcast %254 : f32 to vector<8x1024xf32>
    %314 = arith.mulf %313, %312 : vector<8x1024xf32>
    %315 = vector.broadcast %255 : f32 to vector<8x1024xf32>
    %316 = arith.mulf %315, %253 : vector<8x1024xf32>
    %317 = arith.addf %314, %316 : vector<8x1024xf32>
    %318 = arith.addf %249, %317 : vector<8x1024xf32>
    %319 = vector.extract_strided_slice %302 {offsets = [0, 0], sizes = [8, 256], strides = [1, 1]} : vector<8x1024xf32> to vector<8x256xf32>
    %320 = vector.shape_cast %319 : vector<8x256xf32> to vector<1x8x256xf32>
    %cst_88 = arith.constant dense<0.000000e+00> : vector<1xf32>
    %321 = vector.multi_reduction <add>, %320, %cst_88 [1, 2] : vector<1x8x256xf32> to vector<1xf32>
    %322 = vector.shape_cast %321 : vector<1xf32> to vector<1x1x1xf32>
    %323 = vector.extract %322[0, 0, 0] : f32 from vector<1x1x1xf32>
    %cst_89 = arith.constant 4.8828125E-4 : f32
    %324 = arith.mulf %323, %cst_89 : f32
    %c0_90 = arith.constant 0 : index
    %c0_91 = arith.constant 0 : index
    %325 = memref.load %arg3[%c0_90, %c0_91] : memref<4x4xf32, #tpu.memory_space<smem>>
    %326 = vector.extract_strided_slice %318 {offsets = [0, 0], sizes = [8, 256], strides = [1, 1]} : vector<8x1024xf32> to vector<8x256xf32>
    %327 = vector.broadcast %325 : f32 to vector<8x256xf32>
    %328 = arith.mulf %327, %326 : vector<8x256xf32>
    %c0_92 = arith.constant 0 : index
    %c1_93 = arith.constant 1 : index
    %329 = memref.load %arg3[%c0_92, %c1_93] : memref<4x4xf32, #tpu.memory_space<smem>>
    %330 = vector.extract_strided_slice %318 {offsets = [0, 256], sizes = [8, 256], strides = [1, 1]} : vector<8x1024xf32> to vector<8x256xf32>
    %331 = vector.broadcast %329 : f32 to vector<8x256xf32>
    %332 = arith.mulf %331, %330 : vector<8x256xf32>
    %333 = arith.addf %328, %332 : vector<8x256xf32>
    %c0_94 = arith.constant 0 : index
    %c2_95 = arith.constant 2 : index
    %334 = memref.load %arg3[%c0_94, %c2_95] : memref<4x4xf32, #tpu.memory_space<smem>>
    %335 = vector.extract_strided_slice %318 {offsets = [0, 512], sizes = [8, 256], strides = [1, 1]} : vector<8x1024xf32> to vector<8x256xf32>
    %336 = vector.broadcast %334 : f32 to vector<8x256xf32>
    %337 = arith.mulf %336, %335 : vector<8x256xf32>
    %338 = arith.addf %333, %337 : vector<8x256xf32>
    %c0_96 = arith.constant 0 : index
    %c3_97 = arith.constant 3 : index
    %339 = memref.load %arg3[%c0_96, %c3_97] : memref<4x4xf32, #tpu.memory_space<smem>>
    %340 = vector.extract_strided_slice %318 {offsets = [0, 768], sizes = [8, 256], strides = [1, 1]} : vector<8x1024xf32> to vector<8x256xf32>
    %341 = vector.broadcast %339 : f32 to vector<8x256xf32>
    %342 = arith.mulf %341, %340 : vector<8x256xf32>
    %343 = arith.addf %338, %342 : vector<8x256xf32>
    %c1_98 = arith.constant 1 : index
    %c0_99 = arith.constant 0 : index
    %344 = memref.load %arg2[%c1_98, %c0_99] : memref<2x4xf32, #tpu.memory_space<smem>>
    %345 = vector.broadcast %344 : f32 to vector<8x256xf32>
    %346 = arith.addf %343, %345 : vector<8x256xf32>
    %cst_100 = arith.constant 1.000000e-01 : f32
    %347 = arith.mulf %cst_100, %324 : f32
    %348 = vector.broadcast %347 : f32 to vector<8x256xf32>
    %349 = arith.addf %346, %348 : vector<8x256xf32>
    %350 = vector.extract_strided_slice %317 {offsets = [0, 0], sizes = [8, 256], strides = [1, 1]} : vector<8x1024xf32> to vector<8x256xf32>
    %351 = arith.subf %350, %349 : vector<8x256xf32>
    %352 = arith.mulf %351, %351 : vector<8x256xf32>
    %353 = vector.shape_cast %352 : vector<8x256xf32> to vector<1x8x256xf32>
    %cst_101 = arith.constant dense<0.000000e+00> : vector<1xf32>
    %354 = vector.multi_reduction <add>, %353, %cst_101 [1, 2] : vector<1x8x256xf32> to vector<1xf32>
    %355 = vector.shape_cast %354 : vector<1xf32> to vector<1x1x1xf32>
    %356 = vector.extract %355[0, 0, 0] : f32 from vector<1x1x1xf32>
    %357 = arith.addf %242, %356 : f32
    %358 = vector.extract_strided_slice %318 {offsets = [0, 0], sizes = [8, 256], strides = [1, 1]} : vector<8x1024xf32> to vector<8x256xf32>
    %359 = arith.subf %358, %349 : vector<8x256xf32>
    %c1_102 = arith.constant 1 : index
    %c0_103 = arith.constant 0 : index
    %c0_104 = arith.constant 0 : index
    %360 = vector.load %arg8[%c1_102, %c0_103, %c0_104] : memref<2x8x1024xf32, #tpu.memory_space<vmem>>, vector<1x8x256xf32>
    %361 = vector.shape_cast %360 : vector<1x8x256xf32> to vector<8x256xf32>
    %362 = vector.shape_cast %359 : vector<8x256xf32> to vector<1x8x256xf32>
    tpu.vector_store %arg8[%c1_102, %c0_103, %c0_104], %362 {strides = array<i32>} : memref<2x8x1024xf32, #tpu.memory_space<vmem>>, vector<1x8x256xf32>,
    %363 = vector.extract_strided_slice %302 {offsets = [0, 256], sizes = [8, 256], strides = [1, 1]} : vector<8x1024xf32> to vector<8x256xf32>
    %364 = vector.shape_cast %363 : vector<8x256xf32> to vector<1x8x256xf32>
    %cst_105 = arith.constant dense<0.000000e+00> : vector<1xf32>
    %365 = vector.multi_reduction <add>, %364, %cst_105 [1, 2] : vector<1x8x256xf32> to vector<1xf32>
    %366 = vector.shape_cast %365 : vector<1xf32> to vector<1x1x1xf32>
    %367 = vector.extract %366[0, 0, 0] : f32 from vector<1x1x1xf32>
    %cst_106 = arith.constant 4.8828125E-4 : f32
    %368 = arith.mulf %367, %cst_106 : f32
    %c1_107 = arith.constant 1 : index
    %c0_108 = arith.constant 0 : index
    %369 = memref.load %arg3[%c1_107, %c0_108] : memref<4x4xf32, #tpu.memory_space<smem>>
    %370 = vector.extract_strided_slice %318 {offsets = [0, 0], sizes = [8, 256], strides = [1, 1]} : vector<8x1024xf32> to vector<8x256xf32>
    %371 = vector.broadcast %369 : f32 to vector<8x256xf32>
    %372 = arith.mulf %371, %370 : vector<8x256xf32>
    %c1_109 = arith.constant 1 : index
    %c1_110 = arith.constant 1 : index
    %373 = memref.load %arg3[%c1_109, %c1_110] : memref<4x4xf32, #tpu.memory_space<smem>>
    %374 = vector.extract_strided_slice %318 {offsets = [0, 256], sizes = [8, 256], strides = [1, 1]} : vector<8x1024xf32> to vector<8x256xf32>
    %375 = vector.broadcast %373 : f32 to vector<8x256xf32>
    %376 = arith.mulf %375, %374 : vector<8x256xf32>
    %377 = arith.addf %372, %376 : vector<8x256xf32>
    %c1_111 = arith.constant 1 : index
    %c2_112 = arith.constant 2 : index
    %378 = memref.load %arg3[%c1_111, %c2_112] : memref<4x4xf32, #tpu.memory_space<smem>>
    %379 = vector.extract_strided_slice %318 {offsets = [0, 512], sizes = [8, 256], strides = [1, 1]} : vector<8x1024xf32> to vector<8x256xf32>
    %380 = vector.broadcast %378 : f32 to vector<8x256xf32>
    %381 = arith.mulf %380, %379 : vector<8x256xf32>
    %382 = arith.addf %377, %381 : vector<8x256xf32>
    %c1_113 = arith.constant 1 : index
    %c3_114 = arith.constant 3 : index
    %383 = memref.load %arg3[%c1_113, %c3_114] : memref<4x4xf32, #tpu.memory_space<smem>>
    %384 = vector.extract_strided_slice %318 {offsets = [0, 768], sizes = [8, 256], strides = [1, 1]} : vector<8x1024xf32> to vector<8x256xf32>
    %385 = vector.broadcast %383 : f32 to vector<8x256xf32>
    %386 = arith.mulf %385, %384 : vector<8x256xf32>
    %387 = arith.addf %382, %386 : vector<8x256xf32>
    %c1_115 = arith.constant 1 : index
    %c1_116 = arith.constant 1 : index
    %388 = memref.load %arg2[%c1_115, %c1_116] : memref<2x4xf32, #tpu.memory_space<smem>>
    %389 = vector.broadcast %388 : f32 to vector<8x256xf32>
    %390 = arith.addf %387, %389 : vector<8x256xf32>
    %cst_117 = arith.constant 1.000000e-01 : f32
    %391 = arith.mulf %cst_117, %368 : f32
    %392 = vector.broadcast %391 : f32 to vector<8x256xf32>
    %393 = arith.addf %390, %392 : vector<8x256xf32>
    %394 = vector.extract_strided_slice %317 {offsets = [0, 256], sizes = [8, 256], strides = [1, 1]} : vector<8x1024xf32> to vector<8x256xf32>
    %395 = arith.subf %394, %393 : vector<8x256xf32>
    %396 = arith.mulf %395, %395 : vector<8x256xf32>
    %397 = vector.shape_cast %396 : vector<8x256xf32> to vector<1x8x256xf32>
    %cst_118 = arith.constant dense<0.000000e+00> : vector<1xf32>
    %398 = vector.multi_reduction <add>, %397, %cst_118 [1, 2] : vector<1x8x256xf32> to vector<1xf32>
    %399 = vector.shape_cast %398 : vector<1xf32> to vector<1x1x1xf32>
    %400 = vector.extract %399[0, 0, 0] : f32 from vector<1x1x1xf32>
    %401 = arith.addf %357, %400 : f32
    %402 = vector.extract_strided_slice %318 {offsets = [0, 256], sizes = [8, 256], strides = [1, 1]} : vector<8x1024xf32> to vector<8x256xf32>
    %403 = arith.subf %402, %393 : vector<8x256xf32>
    %c1_119 = arith.constant 1 : index
    %c0_120 = arith.constant 0 : index
    %c256_121 = arith.constant 256 : index
    %404 = vector.load %arg8[%c1_119, %c0_120, %c256_121] : memref<2x8x1024xf32, #tpu.memory_space<vmem>>, vector<1x8x256xf32>
    %405 = vector.shape_cast %404 : vector<1x8x256xf32> to vector<8x256xf32>
    %406 = vector.shape_cast %403 : vector<8x256xf32> to vector<1x8x256xf32>
    tpu.vector_store %arg8[%c1_119, %c0_120, %c256_121], %406 {strides = array<i32>} : memref<2x8x1024xf32, #tpu.memory_space<vmem>>, vector<1x8x256xf32>,
    %407 = vector.extract_strided_slice %302 {offsets = [0, 512], sizes = [8, 256], strides = [1, 1]} : vector<8x1024xf32> to vector<8x256xf32>
    %408 = vector.shape_cast %407 : vector<8x256xf32> to vector<1x8x256xf32>
    %cst_122 = arith.constant dense<0.000000e+00> : vector<1xf32>
    %409 = vector.multi_reduction <add>, %408, %cst_122 [1, 2] : vector<1x8x256xf32> to vector<1xf32>
    %410 = vector.shape_cast %409 : vector<1xf32> to vector<1x1x1xf32>
    %411 = vector.extract %410[0, 0, 0] : f32 from vector<1x1x1xf32>
    %cst_123 = arith.constant 4.8828125E-4 : f32
    %412 = arith.mulf %411, %cst_123 : f32
    %c2_124 = arith.constant 2 : index
    %c0_125 = arith.constant 0 : index
    %413 = memref.load %arg3[%c2_124, %c0_125] : memref<4x4xf32, #tpu.memory_space<smem>>
    %414 = vector.extract_strided_slice %318 {offsets = [0, 0], sizes = [8, 256], strides = [1, 1]} : vector<8x1024xf32> to vector<8x256xf32>
    %415 = vector.broadcast %413 : f32 to vector<8x256xf32>
    %416 = arith.mulf %415, %414 : vector<8x256xf32>
    %c2_126 = arith.constant 2 : index
    %c1_127 = arith.constant 1 : index
    %417 = memref.load %arg3[%c2_126, %c1_127] : memref<4x4xf32, #tpu.memory_space<smem>>
    %418 = vector.extract_strided_slice %318 {offsets = [0, 256], sizes = [8, 256], strides = [1, 1]} : vector<8x1024xf32> to vector<8x256xf32>
    %419 = vector.broadcast %417 : f32 to vector<8x256xf32>
    %420 = arith.mulf %419, %418 : vector<8x256xf32>
    %421 = arith.addf %416, %420 : vector<8x256xf32>
    %c2_128 = arith.constant 2 : index
    %c2_129 = arith.constant 2 : index
    %422 = memref.load %arg3[%c2_128, %c2_129] : memref<4x4xf32, #tpu.memory_space<smem>>
    %423 = vector.extract_strided_slice %318 {offsets = [0, 512], sizes = [8, 256], strides = [1, 1]} : vector<8x1024xf32> to vector<8x256xf32>
    %424 = vector.broadcast %422 : f32 to vector<8x256xf32>
    %425 = arith.mulf %424, %423 : vector<8x256xf32>
    %426 = arith.addf %421, %425 : vector<8x256xf32>
    %c2_130 = arith.constant 2 : index
    %c3_131 = arith.constant 3 : index
    %427 = memref.load %arg3[%c2_130, %c3_131] : memref<4x4xf32, #tpu.memory_space<smem>>
    %428 = vector.extract_strided_slice %318 {offsets = [0, 768], sizes = [8, 256], strides = [1, 1]} : vector<8x1024xf32> to vector<8x256xf32>
    %429 = vector.broadcast %427 : f32 to vector<8x256xf32>
    %430 = arith.mulf %429, %428 : vector<8x256xf32>
    %431 = arith.addf %426, %430 : vector<8x256xf32>
    %c1_132 = arith.constant 1 : index
    %c2_133 = arith.constant 2 : index
    %432 = memref.load %arg2[%c1_132, %c2_133] : memref<2x4xf32, #tpu.memory_space<smem>>
    %433 = vector.broadcast %432 : f32 to vector<8x256xf32>
    %434 = arith.addf %431, %433 : vector<8x256xf32>
    %cst_134 = arith.constant 1.000000e-01 : f32
    %435 = arith.mulf %cst_134, %412 : f32
    %436 = vector.broadcast %435 : f32 to vector<8x256xf32>
    %437 = arith.addf %434, %436 : vector<8x256xf32>
    %438 = vector.extract_strided_slice %317 {offsets = [0, 512], sizes = [8, 256], strides = [1, 1]} : vector<8x1024xf32> to vector<8x256xf32>
    %439 = arith.subf %438, %437 : vector<8x256xf32>
    %440 = arith.mulf %439, %439 : vector<8x256xf32>
    %441 = vector.shape_cast %440 : vector<8x256xf32> to vector<1x8x256xf32>
    %cst_135 = arith.constant dense<0.000000e+00> : vector<1xf32>
    %442 = vector.multi_reduction <add>, %441, %cst_135 [1, 2] : vector<1x8x256xf32> to vector<1xf32>
    %443 = vector.shape_cast %442 : vector<1xf32> to vector<1x1x1xf32>
    %444 = vector.extract %443[0, 0, 0] : f32 from vector<1x1x1xf32>
    %445 = arith.addf %401, %444 : f32
    %446 = vector.extract_strided_slice %318 {offsets = [0, 512], sizes = [8, 256], strides = [1, 1]} : vector<8x1024xf32> to vector<8x256xf32>
    %447 = arith.subf %446, %437 : vector<8x256xf32>
    %c1_136 = arith.constant 1 : index
    %c0_137 = arith.constant 0 : index
    %c512_138 = arith.constant 512 : index
    %448 = vector.load %arg8[%c1_136, %c0_137, %c512_138] : memref<2x8x1024xf32, #tpu.memory_space<vmem>>, vector<1x8x256xf32>
    %449 = vector.shape_cast %448 : vector<1x8x256xf32> to vector<8x256xf32>
    %450 = vector.shape_cast %447 : vector<8x256xf32> to vector<1x8x256xf32>
    tpu.vector_store %arg8[%c1_136, %c0_137, %c512_138], %450 {strides = array<i32>} : memref<2x8x1024xf32, #tpu.memory_space<vmem>>, vector<1x8x256xf32>,
    %451 = vector.extract_strided_slice %302 {offsets = [0, 768], sizes = [8, 256], strides = [1, 1]} : vector<8x1024xf32> to vector<8x256xf32>
    %452 = vector.shape_cast %451 : vector<8x256xf32> to vector<1x8x256xf32>
    %cst_139 = arith.constant dense<0.000000e+00> : vector<1xf32>
    %453 = vector.multi_reduction <add>, %452, %cst_139 [1, 2] : vector<1x8x256xf32> to vector<1xf32>
    %454 = vector.shape_cast %453 : vector<1xf32> to vector<1x1x1xf32>
    %455 = vector.extract %454[0, 0, 0] : f32 from vector<1x1x1xf32>
    %cst_140 = arith.constant 4.8828125E-4 : f32
    %456 = arith.mulf %455, %cst_140 : f32
    %c3_141 = arith.constant 3 : index
    %c0_142 = arith.constant 0 : index
    %457 = memref.load %arg3[%c3_141, %c0_142] : memref<4x4xf32, #tpu.memory_space<smem>>
    %458 = vector.extract_strided_slice %318 {offsets = [0, 0], sizes = [8, 256], strides = [1, 1]} : vector<8x1024xf32> to vector<8x256xf32>
    %459 = vector.broadcast %457 : f32 to vector<8x256xf32>
    %460 = arith.mulf %459, %458 : vector<8x256xf32>
    %c3_143 = arith.constant 3 : index
    %c1_144 = arith.constant 1 : index
    %461 = memref.load %arg3[%c3_143, %c1_144] : memref<4x4xf32, #tpu.memory_space<smem>>
    %462 = vector.extract_strided_slice %318 {offsets = [0, 256], sizes = [8, 256], strides = [1, 1]} : vector<8x1024xf32> to vector<8x256xf32>
    %463 = vector.broadcast %461 : f32 to vector<8x256xf32>
    %464 = arith.mulf %463, %462 : vector<8x256xf32>
    %465 = arith.addf %460, %464 : vector<8x256xf32>
    %c3_145 = arith.constant 3 : index
    %c2_146 = arith.constant 2 : index
    %466 = memref.load %arg3[%c3_145, %c2_146] : memref<4x4xf32, #tpu.memory_space<smem>>
    %467 = vector.extract_strided_slice %318 {offsets = [0, 512], sizes = [8, 256], strides = [1, 1]} : vector<8x1024xf32> to vector<8x256xf32>
    %468 = vector.broadcast %466 : f32 to vector<8x256xf32>
    %469 = arith.mulf %468, %467 : vector<8x256xf32>
    %470 = arith.addf %465, %469 : vector<8x256xf32>
    %c3_147 = arith.constant 3 : index
    %c3_148 = arith.constant 3 : index
    %471 = memref.load %arg3[%c3_147, %c3_148] : memref<4x4xf32, #tpu.memory_space<smem>>
    %472 = vector.extract_strided_slice %318 {offsets = [0, 768], sizes = [8, 256], strides = [1, 1]} : vector<8x1024xf32> to vector<8x256xf32>
    %473 = vector.broadcast %471 : f32 to vector<8x256xf32>
    %474 = arith.mulf %473, %472 : vector<8x256xf32>
    %475 = arith.addf %470, %474 : vector<8x256xf32>
    %c1_149 = arith.constant 1 : index
    %c3_150 = arith.constant 3 : index
    %476 = memref.load %arg2[%c1_149, %c3_150] : memref<2x4xf32, #tpu.memory_space<smem>>
    %477 = vector.broadcast %476 : f32 to vector<8x256xf32>
    %478 = arith.addf %475, %477 : vector<8x256xf32>
    %cst_151 = arith.constant 1.000000e-01 : f32
    %479 = arith.mulf %cst_151, %456 : f32
    %480 = vector.broadcast %479 : f32 to vector<8x256xf32>
    %481 = arith.addf %478, %480 : vector<8x256xf32>
    %482 = vector.extract_strided_slice %317 {offsets = [0, 768], sizes = [8, 256], strides = [1, 1]} : vector<8x1024xf32> to vector<8x256xf32>
    %483 = arith.subf %482, %481 : vector<8x256xf32>
    %484 = arith.mulf %483, %483 : vector<8x256xf32>
    %485 = vector.shape_cast %484 : vector<8x256xf32> to vector<1x8x256xf32>
    %cst_152 = arith.constant dense<0.000000e+00> : vector<1xf32>
    %486 = vector.multi_reduction <add>, %485, %cst_152 [1, 2] : vector<1x8x256xf32> to vector<1xf32>
    %487 = vector.shape_cast %486 : vector<1xf32> to vector<1x1x1xf32>
    %488 = vector.extract %487[0, 0, 0] : f32 from vector<1x1x1xf32>
    %489 = arith.addf %445, %488 : f32
    %490 = vector.extract_strided_slice %318 {offsets = [0, 768], sizes = [8, 256], strides = [1, 1]} : vector<8x1024xf32> to vector<8x256xf32>
    %491 = arith.subf %490, %481 : vector<8x256xf32>
    %c1_153 = arith.constant 1 : index
    %c0_154 = arith.constant 0 : index
    %c768_155 = arith.constant 768 : index
    %492 = vector.load %arg8[%c1_153, %c0_154, %c768_155] : memref<2x8x1024xf32, #tpu.memory_space<vmem>>, vector<1x8x256xf32>
    %493 = vector.shape_cast %492 : vector<1x8x256xf32> to vector<8x256xf32>
    %494 = vector.shape_cast %491 : vector<8x256xf32> to vector<1x8x256xf32>
    tpu.vector_store %arg8[%c1_153, %c0_154, %c768_155], %494 {strides = array<i32>} : memref<2x8x1024xf32, #tpu.memory_space<vmem>>, vector<1x8x256xf32>,
    %cst_156 = arith.constant 6.10351563E-5 : f32
    %495 = arith.mulf %489, %cst_156 : f32
    %c0_157 = arith.constant 0 : index
    %c0_158 = arith.constant 0 : index
    %496 = memref.load %arg9[%c0_157, %c0_158] : memref<1x1xf32, #tpu.memory_space<smem>>
    memref.store %495, %arg9[%c0_157, %c0_158] : memref<1x1xf32, #tpu.memory_space<smem>>
    %cst_159 = arith.constant 6.10351563E-5 : f32
    %497 = arith.mulf %309, %cst_159 : f32
    %c0_160 = arith.constant 0 : index
    %c0_161 = arith.constant 0 : index
    %498 = memref.load %arg10[%c0_160, %c0_161] : memref<1x1xf32, #tpu.memory_space<smem>>
    memref.store %497, %arg10[%c0_160, %c0_161] : memref<1x1xf32, #tpu.memory_space<smem>>
    return
  }
}

</mosaic_0001>

<bundles_post_ra>
// kernel: forward.17
= control target key start
LH: loop header
LB: loop body
LE: loop exit
PB: predicated region body
PF: predicated region fallthrough
CT: control target
= control target key end

     0   :  { %16 = vsyncpa [#allocation4], 0  ;;  %s3316_s0 = inlined_call_operand.vmem [shape: f32[2], index: 0, kind: input, shape index: {}]   ;;  %s3317_s1 = inlined_call_operand.vmem [shape: f32[2], index: 1, kind: input, shape index: {}]   ;;  %s3318_s2 = inlined_call_operand.vmem [shape: f32[2,4], index: 2, kind: input, shape index: {}]   ;;  %s3319_s3 = inlined_call_operand.vmem [shape: f32[4,4], index: 3, kind: input, shape index: {}]   ;;  %s3320_s4 = inlined_call_operand.vmem [shape: f32[8,8], index: 4, kind: input, shape index: {}]   ;;  %s3321_s5 = inlined_call_operand.vmem [shape: f32[2,8,1024], index: 5, kind: input, shape index: {}]   ;;  %s3322_s6 = inlined_call_operand.vmem [shape: f32[2,8,1024], index: 6, kind: input, shape index: {}]   ;;  %s3323_s7 = inlined_call_operand.vmem [shape: f32[2,8,1024], index: 7, kind: input, shape index: {}]   ;;  %s3324_s8 = inlined_call_operand.vmem [shape: f32[2,8,1024], index: 8, kind: output, shape index: {0}]   ;;  %s3325_s9 = inlined_call_operand.hbm [shape: f32[1,1], index: 9, kind: output, shape index: {1}]   ;;  %s3326_s10 = inlined_call_operand.hbm [shape: f32[1,1], index: 10, kind: output, shape index: {2}]  }
   0x1   :  { %17 = vsyncpa [#allocation6], 0 }
   0x2   :  { %18 = vsyncpa [#allocation9], 0 }
   0x3   :  { %19 = vsyncpa [#allocation3], 0  ;;  %s37_s15 = sshll.u32 %s3317_s1, 4  ;;  %s38_s15 = int_to_ptr.vmem [resolvable:$true] %s37_s15 }
   0x4   :  { %20 = vsyncpa [#allocation12], 0  ;;  %s27_s18 = sshll.u32 %s3316_s0, 4  ;;  %s1722_s19 = scalar_lea.vmem %s38_s15, 16  ;;  %s28_s18 = int_to_ptr.vmem [resolvable:$true] %s27_s18 }
   0x5   :  { %p1723_p0 = scmp.ne.s32.totalorder %s38_s15, %s1722_s19  ;;  %p1727_p1 = scmp.lt.s32.totalorder %s38_s15, %s38_s15 }
   0x6   :  { %p1728_p2 = scmp.lt.s32.totalorder %s1722_s19, %s1722_s19 }
   0x8   :  { %p1729_p3 = por %p1728_p2, %p1727_p1 }
   0xa   :  { %p1730_p4 = pnand %p1729_p3, %p1723_p0 }
   0xc   :  { %1733 = shalt.err (!%p1730_p4)
}
   0xd   :  { %s1796_s20 = smov [#allocation5]   ;;  %s1734_s21 = scalar_lea.vmem %s28_s18, 16 }
   0xe   :  { %40 = dma.vmem_to_smem %s38_s15, 16, %s1796_s20, [#allocation6]  }
   0xf   :  { %p1735_p5 = scmp.ne.s32.totalorder %s28_s18, %s1734_s21  ;;  %p1739_p6 = scmp.lt.s32.totalorder %s28_s18, %s28_s18 }
  0x10   :  { %p1740_p7 = scmp.lt.s32.totalorder %s1734_s21, %s1734_s21 }
  0x12   :  { %p1741_p8 = por %p1740_p7, %p1739_p6 }
  0x14   :  { %p1742_p9 = pnand %p1741_p8, %p1735_p5 }
  0x16   :  { %1745 = shalt.err (!%p1742_p9)
}
  0x17   :  { %s1797_s1 = smov [#allocation2]   ;;  %s47_s23 = sshll.u32 %s3318_s2, 4  ;;  %s48_s23 = int_to_ptr.vmem [resolvable:$true] %s47_s23 }
  0x18   :  { %30 = dma.vmem_to_smem %s28_s18, 16, %s1797_s1, [#allocation4]  }
  0x19   :  { %s57_s26 = sshll.u32 %s3319_s3, 4  ;;  %s1746_s27 = scalar_lea.vmem %s48_s23, 32  ;;  %s58_s26 = int_to_ptr.vmem [resolvable:$true] %s57_s26 }
  0x1a   :  { %p1747_p10 = scmp.ne.s32.totalorder %s48_s23, %s1746_s27  ;;  %p1751_p11 = scmp.lt.s32.totalorder %s48_s23, %s48_s23 }
  0x1b   :  { %p1752_p12 = scmp.lt.s32.totalorder %s1746_s27, %s1746_s27 }
  0x1d   :  { %p1753_p13 = por %p1752_p12, %p1751_p11 }
  0x1f   :  { %p1754_p0 = pnand %p1753_p13, %p1747_p10 }
  0x21   :  { %1757 = shalt.err (!%p1754_p0)
}
  0x22   :  { %s1798_s28 = smov [#allocation7]   ;;  %s1758_s29 = scalar_lea.vmem %s58_s26, 64 }
  0x23   :  { %50 = dma.vmem_to_smem %s48_s23, 32, %s1798_s28, [#allocation6]  }
  0x24   :  { %p1759_p1 = scmp.ne.s32.totalorder %s58_s26, %s1758_s29  ;;  %p1763_p2 = scmp.lt.s32.totalorder %s58_s26, %s58_s26 }
  0x25   :  { %p1764_p3 = scmp.lt.s32.totalorder %s1758_s29, %s1758_s29 }
  0x27   :  { %p1765_p4 = por %p1764_p3, %p1763_p2 }
  0x29   :  { %p1766_p5 = pnand %p1765_p4, %p1759_p1 }
  0x2b   :  { %1769 = shalt.err (!%p1766_p5)
}
  0x2c   :  { %s1799_s2 = smov [#allocation8]  }
  0x2d   :  { %60 = dma.vmem_to_smem %s58_s26, 64, %s1799_s2, [#allocation9]  }
  0x2e   :  { %1786 = dma.done.wait [#allocation4], 16  }
  0x2f   :  { %1787 = vsyncadd [#allocation4], 4294967280 }
  0x30   :  { %1788 = dma.done.wait [#allocation6], 48  }
  0x31   :  { %1789 = vsyncadd [#allocation6], 4294967248 }
  0x32   :  { %1790 = dma.done.wait [#allocation9], 64  }
  0x33   :  { %1791 = vsyncadd [#allocation9], 4294967232 }
  0x34   :  { %81 = sfence }
  0x35   :  { %v82_v0 = vld [vmem:[%s3320_s4] sm:$0xff]  ;;  %v1800_v1 = vmov 2   ;;  %v1801_v2 = vmov 0   ;;  %v1802_v3 = vmov 3   ;;  %v1803_v4 = vmov 1   ;;  %v1894_v15 = vld [vmem:[%s3322_s6 + $0x8] sm:$0xff] }
  0x36   :  { %1715 = vset.pattern.permute.xlu1 %v1800_v1  ;;  %1713 = vset.pattern.permute.xlu0 %v1801_v2  ;;  %v1804_v5 = vmov 4   ;;  %v1805_v6 = vmov 5   ;;  %v1806_v7 = vmov 6   ;;  %v1807_v8 = vmov 7   ;;  %v1889_v14 = vld [vmem:[%s3322_s6] sm:$0xff]  ;;  %v1899_v16 = vld [vmem:[%s3322_s6 + $0x10] sm:$0xff] }
  0x37   :  { %207 = vperm.xlu1 %1715, %v82_v0   ;;  %111 = vperm.xlu0 %1713, %v82_v0   ;;  %v114_v9 = vlaneseq  ;;  %v1938_v34 = vld [vmem:[%s3322_s6 + $0x18] sm:$0xff]  ;;  %v1943_v35 = vld [vmem:[%s3322_s6 + $0x20] sm:$0xff]  ;;  %v1952_v38 = vld [vmem:[%s3322_s6 + $0x28] sm:$0xff]  ;;  %s108_s1 = sld [smem:[#allocation5]] }
  0x38   :  { %v1967_v44 = vld [vmem:[%s3322_s6 + $0x30] sm:$0xff]  ;;  %v1980_v49 = vld [vmem:[%s3322_s6 + $0x38] sm:$0xff]  ;;  %v2083_v48 = vld [vmem:[%s3322_s6 + $0x60] sm:$0xff]  ;;  %s2914_s4 = sld [smem:[#allocation8]] }
  0x39   :  { %v115_v10 = vshrl.u32 %v114_v9, 7  ;;  %v2078_v51 = vld [vmem:[%s3322_s6 + $0x58] sm:$0xff]  ;;  %v2099_v2 = vld [vmem:[%s3322_s6 + $0x70] sm:$0xff]  ;;  %s2916_s11 = sld [smem:[#allocation8 + $0x1]] }
  0x3a   :  { %3369 = vst [vmem:[#allocation23_spill] sm:$0xff] %v2078_v51  ;;  %3370 = vst [vmem:[#allocation24_spill] sm:$0xff] %v2099_v2  ;;  %v2104_v46 = vld [vmem:[%s3322_s6 + $0x78] sm:$0xff]  ;;  %s1593_s16 = sld [smem:[#allocation8 + $0x2]] }
  0x3b   :  { %1716 = vset.pattern.permute.xlu1 %v1802_v3  ;;  %1714 = vset.pattern.permute.xlu0 %v1803_v4  ;;  %v1880_v11 = vsub.s32 0, %v115_v10  ;;  %v1882_v12 = vsub.s32 1, %v115_v10  ;;  %v1884_v13 = vsub.s32 2, %v115_v10  ;;  %v1901_v17 = vsub.s32 3, %v115_v10  ;;  %3371 = vst [vmem:[#allocation25_spill] sm:$0xff] %v2104_v46  ;;  %s626_s17 = sld [smem:[#allocation7]] }
  0x3c   :  { %259 = vperm.xlu1 %1716, %v82_v0   ;;  %155 = vperm.xlu0 %1714, %v82_v0   ;;  %v1903_v18 = vsub.s32 4, %v115_v10  ;;  %v1917_v25 = vsub.s32 5, %v115_v10  ;;  %v1925_v29 = vsub.s32 6, %v115_v10  ;;  %v1962_v43 = vsub.s32 7, %v115_v10  ;;  %v2054_v10 = vld [vmem:[%s3322_s6 + $0x48] sm:$0xff]  ;;  %s1595_s23 = sld [smem:[#allocation8 + $0x80]] }
  0x3d   :  { %3364 = vst [vmem:[#allocation18_spill] sm:$0xff] %v1882_v12  ;;  %3365 = vst [vmem:[#allocation19_spill] sm:$0xff] %v1884_v13  ;;  %v117_v19 = vrot.slane %v1889_v14, %v1880_v11  ;;  %v121_v20 = vrot.slane %v1894_v15, %v1880_v11  ;;  %v125_v21 = vrot.slane %v1899_v16, %v1880_v11  ;;  %s1596_s24 = sld [smem:[#allocation8 + $0x81]] }
  0x3e   :  { %v213_v26 = vrot.slane %v1889_v14, %v1884_v13  ;;  %v217_v27 = vrot.slane %v1894_v15, %v1884_v13  ;;  %v221_v28 = vrot.slane %v1899_v16, %v1884_v13  ;;  %v129_v39 = vrot.slane %v1938_v34, %v1880_v11  ;;  %3367 = vst [vmem:[#allocation21_spill] sm:$0xff] %v2054_v10  ;;  %s1597_s25 = sld [smem:[#allocation8 + $0x82]] }
  0x3f   :  { %v133_v40 = vrot.slane %v1943_v35, %v1880_v11  ;;  %v137_v45 = vrot.slane %v1952_v38, %v1880_v11  ;;  %v141_v50 = vrot.slane %v1967_v44, %v1880_v11  ;;  %v145_v52 = vrot.slane %v1980_v49, %v1880_v11  ;;  %s1598_s26 = sld [smem:[#allocation8 + $0x83]] }
  0x40   :  { %1717 = vset.pattern.permute.xlu1 %v1804_v5  ;;  %1718 = vset.pattern.permute.xlu0 %v1805_v6  ;;  %v225_v58 = vrot.slane %v1938_v34, %v1884_v13  ;;  %v2002_v59 = vrot.slane %v1889_v14, %v1962_v43  ;;  %v2006_v60 = vrot.slane %v1894_v15, %v1962_v43  ;;  %v2094_v5 = vld [vmem:[%s3322_s6 + $0x68] sm:$0xff]  ;;  %s1599_s27 = sld [smem:[#allocation7 + $0x1]] }
  0x41   :  { %311 = vperm.xlu1 %1717, %v82_v0   ;;  %363 = vperm.xlu0 %1718, %v82_v0   ;;  %v2010_v61 = vrot.slane %v1899_v16, %v1962_v43  ;;  %v229_v62 = vrot.slane %v1943_v35, %v1884_v13  ;;  %v233_v63 = vrot.slane %v1952_v38, %v1884_v13  ;;  %s1600_s13 = sld [smem:[#allocation8 + $0x100]] }
  0x42   :  { %v241_v1 = vrot.slane %v1980_v49, %v1884_v13  ;;  %v2112_v42 = vrot.slane %v1938_v34, %v1962_v43  ;;  %v2122_v33 = vrot.slane %v1943_v35, %v1962_v43  ;;  %v2126_v4 = vrot.slane %v1952_v38, %v1962_v43  ;;  %s1601_s14 = sld [smem:[#allocation8 + $0x101]] }
  0x43   :  { %v2130_v57 = vrot.slane %v1967_v44, %v1962_v43  ;;  %v2134_v41 = vrot.slane %v1980_v49, %v1962_v43  ;;  %v2238_v37 = vrot.slane %v2054_v10, %v1962_v43  ;;  %v2246_v55 = vrot.slane %v2078_v51, %v1962_v43  ;;  %s1602_s15 = sld [smem:[#allocation8 + $0x102]] }
  0x44   :  { %3372 = vst [vmem:[#allocation26_spill] sm:$0xff] %v2126_v4  ;;  %v2254_v53 = vrot.slane %v2083_v48, %v1962_v43  ;;  %v2258_v31 = vrot.slane %v2094_v5, %v1962_v43  ;;  %v2262_v30 = vrot.slane %v2099_v2, %v1962_v43  ;;  %v2266_v24 = vrot.slane %v2104_v46, %v1962_v43 }
  0x45   :  { %1719 = vset.pattern.permute.xlu1 %v1806_v7  ;;  %1721 = vset.pattern.permute.xlu0 %v1807_v8  ;;  %v2063_v7 = vld [vmem:[%s3322_s6 + $0x50] sm:$0xff]  ;;  %3373 = vst [vmem:[#allocation27_spill] sm:$0xff] %v2130_v57  ;;  %3374 = vst [vmem:[#allocation28_spill] sm:$0xff] %v2134_v41 }
  0x46   :  { %415 = vperm.xlu1 %1719, %v82_v0   ;;  %3368 = vst [vmem:[#allocation22_spill] sm:$0xff] %v2063_v7  ;;  %3376 = vst [vmem:[#allocation30_spill] sm:$0xff] %v2238_v37  ;;  %v2242_v56 = vrot.slane %v2063_v7, %v1962_v43 }
  0x47   :  { %3378 = vst [vmem:[#allocation32_spill] sm:$0xff] %v2246_v55  ;;  %3380 = vst [vmem:[#allocation34_spill] sm:$0xff] %v2254_v53 }
  0x48   :  { %3377 = vst [vmem:[#allocation31_spill] sm:$0xff] %v2242_v56  ;;  %3381 = vst [vmem:[#allocation35_spill] sm:$0xff] %v2258_v31 }
  0x49   :  { %3382 = vst [vmem:[#allocation36_spill] sm:$0xff] %v2262_v30  ;;  %3383 = vst [vmem:[#allocation37_spill] sm:$0xff] %v2266_v24  ;;  %v3390_v30 = vrot.slane %v2078_v51, %v1880_v11 }
  0x4a   :  { %1720 = vset.pattern.permute.xlu1 %v1807_v8  ;;  %v2049_v8 = vld [vmem:[%s3322_s6 + $0x40] sm:$0xff]  ;;  %s1594_s6 = sld [smem:[#allocation8 + $0x3]] }
  0x4b   :  { %467 = vperm.xlu1 %1720, %v82_v0   ;;  %v237_v0 = vrot.slane %v1967_v44, %v1884_v13  ;;  %3366 = vst [vmem:[#allocation20_spill] sm:$0xff] %v2049_v8  ;;  %v865_v6 = vrot.slane %v2049_v8, %v1880_v11  ;;  %v2234_v32 = vrot.slane %v2049_v8, %v1962_v43 }
  0x4c   :  { %v3397_v13 = vrot.slane %v1899_v16, %v1901_v17 }
  0x4d   :  { %3375 = vst [vmem:[#allocation29_spill] sm:$0xff] %v2234_v32  ;;  %v3396_v32 = vrot.slane %v1894_v15, %v1901_v17 }
  0xb2   :  { %v2248_v54 = vpop.permute.xlu1 %207  ;;  %v2250_v36 = vpop.permute.xlu0 %111 }
  0xb3   :  { %3379 = vst [vmem:[#allocation33_spill] sm:$0xff] %v2248_v54  ;;  %v146_v23 = vmul.f32 %v117_v19, %v2250_v36  ;;  %v147_v22 = vmul.f32 %v121_v20, %v2250_v36  ;;  %v148_v3 = vmul.f32 %v125_v21, %v2250_v36  ;;  %v242_v43 = vmul.f32 %v213_v26, %v2248_v54 }
  0xb4   :  { %v243_v19 = vmul.f32 %v217_v27, %v2248_v54  ;;  %v244_v20 = vmul.f32 %v221_v28, %v2248_v54  ;;  %v149_v21 = vmul.f32 %v129_v39, %v2250_v36  ;;  %v150_v26 = vmul.f32 %v133_v40, %v2250_v36 }
  0xb5   :  { %v151_v27 = vmul.f32 %v137_v45, %v2250_v36  ;;  %v152_v28 = vmul.f32 %v141_v50, %v2250_v36  ;;  %v153_v39 = vmul.f32 %v145_v52, %v2250_v36  ;;  %v245_v40 = vmul.f32 %v225_v58, %v2248_v54 }
  0xb6   :  { %v246_v45 = vmul.f32 %v229_v62, %v2248_v54  ;;  %v247_v50 = vmul.f32 %v233_v63, %v2248_v54  ;;  %v248_v52 = vmul.f32 %v237_v0, %v2248_v54  ;;  %v249_v58 = vmul.f32 %v241_v1, %v2248_v54 }
  0xb7   :  { %v2332_v47 = vpop.permute.xlu1 %259  ;;  %v2334_v9 = vpop.permute.xlu0 %155  ;;  %v2340_v62 = vmul.f32 %v865_v6, %v2250_v36  ;;  %v3386_v63 = vrot.slane %v2054_v10, %v1880_v11  ;;  %v3388_v1 = vrot.slane %v2063_v7, %v1880_v11  ;;  %v2358_v31 = vmul.f32 %v3390_v30, %v2250_v36 }
  0xb8   :  { %3384 = vst [vmem:[#allocation38_spill] sm:$0xff] %v2334_v9  ;;  %v3392_v6 = vrot.slane %v1889_v14, %v1882_v12  ;;  %v3395_v30 = vrot.slane %v1889_v14, %v1901_v17  ;;  %v3398_v54 = vrot.slane %v1938_v34, %v1882_v12 }
  0xb9   :  { %3385 = vst [vmem:[#allocation39_spill] sm:$0xff] %v2340_v62  ;;  %v2346_v0 = vmul.f32 %v3386_v63, %v2250_v36  ;;  %v2352_v24 = vmul.f32 %v3388_v1, %v2250_v36  ;;  %3391 = vst [vmem:[#allocation42_spill] sm:$0xff] %v2358_v31  ;;  %v3393_v63 = vrot.slane %v1894_v15, %v1882_v12 }
  0xba   :  { %v190_v53 = vmul.f32 %v3392_v6, %v2334_v9  ;;  %v3394_v1 = vrot.slane %v1899_v16, %v1882_v12  ;;  %v294_v37 = vmul.f32 %v3395_v30, %v2332_v47  ;;  %v295_v6 = vmul.f32 %v3396_v32, %v2332_v47 }
  0xbb   :  { %3387 = vst [vmem:[#allocation40_spill] sm:$0xff] %v2346_v0  ;;  %3389 = vst [vmem:[#allocation41_spill] sm:$0xff] %v2352_v24  ;;  %v191_v55 = vmul.f32 %v3393_v63, %v2334_v9  ;;  %v296_v63 = vmul.f32 %v3397_v13, %v2332_v47  ;;  %v3399_v31 = vrot.slane %v1943_v35, %v1882_v12 }
  0xbc   :  { %v192_v56 = vmul.f32 %v3394_v1, %v2334_v9  ;;  %v193_v1 = vmul.f32 %v3398_v54, %v2334_v9  ;;  %v198_v24 = vadd.f32 %v190_v53, %v146_v23  ;;  %v3400_v32 = vrot.slane %v1952_v38, %v1882_v12  ;;  %v2404_v23 = vpop.permute.xlu1 %311 }
  0xbd   :  { %v194_v30 = vmul.f32 %v3399_v31, %v2334_v9  ;;  %v199_v0 = vadd.f32 %v191_v55, %v147_v22  ;;  %v3401_v13 = vrot.slane %v1967_v44, %v1882_v12  ;;  %v3402_v54 = vrot.slane %v1980_v49, %v1882_v12  ;;  %v2406_v22 = vpop.permute.xlu0 %363 }
  0xbe   :  { %v200_v62 = vadd.f32 %v192_v56, %v148_v3  ;;  %v195_v51 = vmul.f32 %v3400_v32, %v2334_v9  ;;  %v201_v8 = vadd.f32 %v193_v1, %v149_v21  ;;  %v250_v53 = vadd.f32 %v242_v43, %v198_v24 }
  0xbf   :  { %v196_v7 = vmul.f32 %v3401_v13, %v2334_v9  ;;  %v197_v10 = vmul.f32 %v3402_v54, %v2334_v9  ;;  %v202_v31 = vadd.f32 %v194_v30, %v150_v26  ;;  %v251_v55 = vadd.f32 %v243_v19, %v199_v0 }
  0xc0   :  { %v252_v56 = vadd.f32 %v244_v20, %v200_v62  ;;  %v203_v3 = vadd.f32 %v195_v51, %v151_v27  ;;  %v3403_v32 = vrot.slane %v1889_v14, %v1903_v18  ;;  %v3404_v12 = vrot.slane %v1894_v15, %v1903_v18 }
  0xc1   :  { %v3405_v21 = vrot.slane %v1899_v16, %v1903_v18  ;;  %v3406_v24 = vrot.slane %v1889_v14, %v1917_v25  ;;  %v302_v43 = vadd.f32 %v294_v37, %v250_v53  ;;  %v303_v19 = vadd.f32 %v295_v6, %v251_v55  ;;  %v2432_v37 = vpop.permute.xlu1 %415 }
  0xc2   :  { %v346_v13 = vmul.f32 %v3403_v32, %v2404_v23  ;;  %v347_v54 = vmul.f32 %v3404_v12, %v2404_v23  ;;  %v304_v20 = vadd.f32 %v296_v63, %v252_v56  ;;  %v3407_v27 = vrot.slane %v1894_v15, %v1917_v25 }
  0xc3   :  { %v348_v26 = vmul.f32 %v3405_v21, %v2404_v23  ;;  %v398_v51 = vmul.f32 %v3406_v24, %v2406_v22  ;;  %v3408_v12 = vrot.slane %v1899_v16, %v1917_v25  ;;  %v204_v1 = vadd.f32 %v196_v7, %v152_v28 }
  0xc4   :  { %v399_v62 = vmul.f32 %v3407_v27, %v2406_v22  ;;  %v205_v30 = vadd.f32 %v197_v10, %v153_v39  ;;  %v253_v32 = vadd.f32 %v245_v40, %v201_v8  ;;  %v354_v21 = vadd.f32 %v346_v13, %v302_v43 }
  0xc5   :  { %v400_v0 = vmul.f32 %v3408_v12, %v2406_v22  ;;  %v355_v9 = vadd.f32 %v347_v54, %v303_v19  ;;  %v356_v46 = vadd.f32 %v348_v26, %v304_v20  ;;  %v254_v24 = vadd.f32 %v246_v45, %v202_v31 }
  0xc6   :  { %v255_v6 = vadd.f32 %v247_v50, %v203_v3  ;;  %v256_v63 = vadd.f32 %v248_v52, %v204_v1  ;;  %v257_v53 = vadd.f32 %v249_v58, %v205_v30  ;;  %v3409_v55 = vrot.slane %v1938_v34, %v1901_v17 }
  0xc7   :  { %v406_v27 = vadd.f32 %v398_v51, %v354_v21  ;;  %v407_v2 = vadd.f32 %v399_v62, %v355_v9  ;;  %v408_v12 = vadd.f32 %v400_v0, %v356_v46  ;;  %v3410_v7 = vrot.slane %v1889_v14, %v1925_v29  ;;  %v2466_v51 = vpop.permute.xlu1 %467 }
  0xc8   :  { %v297_v56 = vmul.f32 %v3409_v55, %v2332_v47  ;;  %v3411_v10 = vrot.slane %v1894_v15, %v1925_v29  ;;  %v3412_v39 = vrot.slane %v1899_v16, %v1925_v29  ;;  %v3413_v9 = vrot.slane %v1943_v35, %v1901_v17 }
  0xc9   :  { %v450_v8 = vmul.f32 %v3410_v7, %v2432_v37  ;;  %v3414_v14 = vrot.slane %v1952_v38, %v1901_v17  ;;  %v3415_v15 = vrot.slane %v1967_v44, %v1901_v17  ;;  %v3416_v16 = vrot.slane %v1980_v49, %v1901_v17 }
  0xca   :  { %v451_v28 = vmul.f32 %v3411_v10, %v2432_v37  ;;  %v452_v40 = vmul.f32 %v3412_v39, %v2432_v37  ;;  %v298_v46 = vmul.f32 %v3413_v9, %v2332_v47  ;;  %v305_v31 = vadd.f32 %v297_v56, %v253_v32 }
  0xcb   :  { %v299_v45 = vmul.f32 %v3414_v14, %v2332_v47  ;;  %v458_v50 = vadd.f32 %v450_v8, %v406_v27  ;;  %v300_v52 = vmul.f32 %v3415_v15, %v2332_v47  ;;  %v301_v58 = vmul.f32 %v3416_v16, %v2332_v47 }
  0xcc   :  { %v459_v3 = vadd.f32 %v451_v28, %v407_v2  ;;  %v460_v13 = vadd.f32 %v452_v40, %v408_v12  ;;  %v306_v54 = vadd.f32 %v298_v46, %v254_v24  ;;  %v3417_v20 = vrot.slane %v1938_v34, %v1903_v18 }
  0xcd   :  { %v307_v26 = vadd.f32 %v299_v45, %v255_v6  ;;  %v308_v43 = vadd.f32 %v300_v52, %v256_v63  ;;  %v309_v19 = vadd.f32 %v301_v58, %v257_v53  ;;  %v3418_v0 = vrot.slane %v1943_v35, %v1903_v18  ;;  %v2489_v6 = vld [vmem:[%s3321_s5] sm:$0xff]  ;;  %v2494_v63 = vld [vmem:[%s3321_s5 + $0x8] sm:$0xff]  ;;  %v2499_v53 = vld [vmem:[%s3321_s5 + $0x10] sm:$0xff] }
  0xce   :  { %v349_v62 = vmul.f32 %v3417_v20, %v2404_v23  ;;  %v502_v2 = vmul.f32 %v2002_v59, %v2466_v51  ;;  %v503_v30 = vmul.f32 %v2006_v60, %v2466_v51  ;;  %v504_v32 = vmul.f32 %v2010_v61, %v2466_v51 }
  0xcf   :  { %v350_v1 = vmul.f32 %v3418_v0, %v2404_v23  ;;  %v3419_v21 = vrot.slane %v1952_v38, %v1903_v18  ;;  %v3420_v55 = vrot.slane %v1967_v44, %v1903_v18  ;;  %v3421_v27 = vrot.slane %v1980_v49, %v1903_v18 }
  0xd0   :  { %v357_v7 = vadd.f32 %v349_v62, %v305_v31  ;;  %v510_v10 = vadd.f32 %v502_v2, %v458_v50  ;;  %v511_v28 = vadd.f32 %v503_v30, %v459_v3  ;;  %v512_v39 = vadd.f32 %v504_v32, %v460_v13 }
  0xd1   :  { %v351_v24 = vmul.f32 %v3419_v21, %v2404_v23  ;;  %v352_v56 = vmul.f32 %v3420_v55, %v2404_v23  ;;  %v353_v12 = vmul.f32 %v3421_v27, %v2404_v23  ;;  %v358_v8 = vadd.f32 %v350_v1, %v306_v54 }
  0xd2   :  { %v3422_v14 = vrot.slane %v1938_v34, %v1917_v25  ;;  %v3423_v15 = vrot.slane %v1943_v35, %v1917_v25  ;;  %v519_v16 = vsub.f32 %v511_v28, %v2494_v63  ;;  %v520_v58 = vsub.f32 %v512_v39, %v2499_v53 }
  0xd3   :  { %v359_v40 = vadd.f32 %v351_v24, %v307_v26  ;;  %v360_v9 = vadd.f32 %v352_v56, %v308_v43  ;;  %v361_v46 = vadd.f32 %v353_v12, %v309_v19  ;;  %v593_v50 = vadd.f32 %v511_v28, %v510_v10 }
  0xd4   :  { %v401_v45 = vmul.f32 %v3422_v14, %v2406_v22  ;;  %v402_v52 = vmul.f32 %v3423_v15, %v2406_v22  ;;  %v518_v31 = vsub.f32 %v510_v10, %v2489_v6  ;;  %v3424_v3 = vrot.slane %v1952_v38, %v1917_v25 }
  0xd5   :  { %v3425_v54 = vrot.slane %v1967_v44, %v1917_v25  ;;  %v3426_v43 = vrot.slane %v1980_v49, %v1917_v25  ;;  %v527_v62 = vmul.f32 %v519_v16, %v519_v16  ;;  %v528_v0 = vmul.f32 %v520_v58, %v520_v58  ;;  %594 = vadd.xlane.f32.xlu1 %v593_v50 }
  0xd6   :  { %v403_v13 = vmul.f32 %v3424_v3, %v2406_v22  ;;  %v409_v20 = vadd.f32 %v401_v45, %v357_v7  ;;  %v526_v1 = vmul.f32 %v518_v31, %v518_v31  ;;  %v410_v2 = vadd.f32 %v402_v52, %v358_v8  ;;  %v2575_v31 = vld [vmem:[%s3321_s5 + $0x28] sm:$0xff]  ;;  %v2580_v3 = vld [vmem:[%s3321_s5 + $0x30] sm:$0xff] }
  0xd7   :  { %v404_v26 = vmul.f32 %v3425_v54, %v2406_v22  ;;  %v405_v19 = vmul.f32 %v3426_v43, %v2406_v22  ;;  %v3427_v24 = vrot.slane %v1938_v34, %v1925_v29  ;;  %v3428_v27 = vrot.slane %v1943_v35, %v1925_v29  ;;  %3432 = vst [vmem:[#allocation43_spill] sm:$0xff] %v2575_v31 }
  0xd8   :  { %v411_v30 = vadd.f32 %v403_v13, %v359_v40  ;;  %v534_v56 = vadd.f32 %v527_v62, %v526_v1  ;;  %v3429_v7 = vrot.slane %v1952_v38, %v1925_v29  ;;  %v3430_v8 = vrot.slane %v1967_v44, %v1925_v29  ;;  %v2559_v44 = vld [vmem:[%s3321_s5 + $0x18] sm:$0xff]  ;;  %3433 = vst [vmem:[#allocation44_spill] sm:$0xff] %v2580_v3 }
  0xd9   :  { %v412_v32 = vadd.f32 %v404_v26, %v360_v9  ;;  %v413_v21 = vadd.f32 %v405_v19, %v361_v46  ;;  %v453_v55 = vmul.f32 %v3427_v24, %v2432_v37  ;;  %v454_v12 = vmul.f32 %v3428_v27, %v2432_v37  ;;  %v2585_v13 = vld [vmem:[%s3321_s5 + $0x38] sm:$0xff] }
  0xda   :  { %v455_v10 = vmul.f32 %v3429_v7, %v2432_v37  ;;  %v456_v28 = vmul.f32 %v3430_v8, %v2432_v37  ;;  %v3431_v34 = vrot.slane %v1980_v49, %v1925_v29  ;;  %v505_v35 = vmul.f32 %v2112_v42, %v2466_v51  ;;  %v2564_v49 = vld [vmem:[%s3321_s5 + $0x20] sm:$0xff]  ;;  %3434 = vst [vmem:[#allocation45_spill] sm:$0xff] %v2585_v13  ;;  %v3440_v27 = vld [vmem:[#allocation25_spill] sm:$0xff] }
  0xdb   :  { %v461_v9 = vadd.f32 %v453_v55, %v409_v20  ;;  %v506_v46 = vmul.f32 %v2122_v33, %v2466_v51  ;;  %v535_v14 = vadd.f32 %v534_v56, %v528_v0  ;;  %v462_v38 = vadd.f32 %v454_v12, %v410_v2 }
  0xdc   :  { %v457_v40 = vmul.f32 %v3431_v34, %v2432_v37  ;;  %v463_v45 = vadd.f32 %v455_v10, %v411_v30  ;;  %v464_v15 = vadd.f32 %v456_v28, %v412_v32  ;;  %v507_v16 = vmul.f32 %v2126_v4, %v2466_v51  ;;  %v3437_v30 = vld [vmem:[#allocation24_spill] sm:$0xff]  ;;  %v3463_v4 = vld [vmem:[#allocation19_spill] sm:$0xff] }
  0xdd   :  { %v508_v58 = vmul.f32 %v2130_v57, %v2466_v51  ;;  %v509_v50 = vmul.f32 %v2134_v41, %v2466_v51  ;;  %v513_v54 = vadd.f32 %v505_v35, %v461_v9  ;;  %v514_v26 = vadd.f32 %v506_v46, %v462_v38  ;;  %v3444_v46 = vld [vmem:[#allocation38_spill] sm:$0xff] }
  0xde   :  { %v465_v52 = vadd.f32 %v457_v40, %v413_v21  ;;  %v3435_v43 = vrot.slane %v2083_v48, %v1880_v11  ;;  %v3436_v20 = vrot.slane %v2094_v5, %v1880_v11  ;;  %v515_v0 = vadd.f32 %v507_v16, %v463_v45  ;;  %v3446_v38 = vld [vmem:[#allocation18_spill] sm:$0xff]  ;;  %v3448_v16 = vld [vmem:[#allocation21_spill] sm:$0xff] }
  0xdf   :  { %v516_v1 = vadd.f32 %v508_v58, %v464_v15  ;;  %v3438_v32 = vrot.slane %v3437_v30, %v1880_v11  ;;  %v521_v24 = vsub.f32 %v513_v54, %v2559_v44  ;;  %v522_v55 = vsub.f32 %v514_v26, %v2564_v49 }
  0xe0   :  { %v898_v19 = vmul.f32 %v3435_v43, %v2250_v36  ;;  %v899_v62 = vmul.f32 %v3436_v20, %v2250_v36  ;;  %v517_v2 = vadd.f32 %v509_v50, %v465_v52  ;;  %v2601_v56 = vadd.f32 %v513_v54, %v512_v39  ;;  %v3445_v39 = vld [vmem:[#allocation20_spill] sm:$0xff] }
  0xe1   :  { %v900_v21 = vmul.f32 %v3438_v32, %v2250_v36  ;;  %v3441_v12 = vrot.slane %v3440_v27, %v1880_v11  ;;  %v523_v10 = vsub.f32 %v515_v0, %v2575_v31  ;;  %v524_v8 = vsub.f32 %v516_v1, %v2580_v3 }
  0xe2   :  { %3439 = vst [vmem:[#allocation24_spill] sm:$0xff] %v2601_v56  ;;  %v525_v28 = vsub.f32 %v517_v2, %v2585_v13  ;;  %v2610_v34 = vadd.f32 %v515_v0, %v514_v26  ;;  %v529_v40 = vmul.f32 %v521_v24, %v521_v24  ;;  %v530_v9 = vmul.f32 %v522_v55, %v522_v55  ;;  %v3450_v26 = vld [vmem:[#allocation22_spill] sm:$0xff]  ;;  %v3452_v0 = vld [vmem:[#allocation23_spill] sm:$0xff] }
  0xe3   :  { %v901_v7 = vmul.f32 %v3441_v12, %v2250_v36  ;;  %v2612_v35 = vadd.f32 %v517_v2, %v516_v1  ;;  %v3447_v45 = vrot.slane %v3445_v39, %v3446_v38  ;;  %v531_v52 = vmul.f32 %v523_v10, %v523_v10 }
  0xe4   :  { %3442 = vst [vmem:[#allocation25_spill] sm:$0xff] %v2610_v34  ;;  %v532_v11 = vmul.f32 %v524_v8, %v524_v8  ;;  %v533_v36 = vmul.f32 %v525_v28, %v525_v28  ;;  %v3449_v58 = vrot.slane %v3448_v16, %v3446_v38  ;;  %v536_v54 = vadd.f32 %v535_v14, %v529_v40  ;;  %v3458_v40 = vld [vmem:[#allocation39_spill] sm:$0xff]  ;;  %v3461_v34 = vld [vmem:[#allocation42_spill] sm:$0xff] }
  0xe5   :  { %3443 = vst [vmem:[#allocation46_spill] sm:$0xff] %v2612_v35  ;;  %v934_v15 = vmul.f32 %v3447_v45, %v3444_v46  ;;  %v3451_v43 = vrot.slane %v3450_v26, %v3446_v38  ;;  %v3453_v1 = vrot.slane %v3452_v0, %v3446_v38  ;;  %v3454_v32 = vrot.slane %v2083_v48, %v3446_v38 }
  0xe6   :  { %v935_v50 = vmul.f32 %v3449_v58, %v3444_v46  ;;  %v3455_v55 = vrot.slane %v2094_v5, %v3446_v38  ;;  %v3456_v12 = vrot.slane %v3437_v30, %v3446_v38  ;;  %v3457_v8 = vrot.slane %v3440_v27, %v3446_v38 }
  0xe7   :  { %v936_v20 = vmul.f32 %v3451_v43, %v3444_v46  ;;  %v937_v2 = vmul.f32 %v3453_v1, %v3444_v46  ;;  %v938_v24 = vmul.f32 %v3454_v32, %v3444_v46  ;;  %v942_v45 = vadd.f32 %v934_v15, %v3458_v40  ;;  %v3459_v43 = vld [vmem:[#allocation40_spill] sm:$0xff]  ;;  %v3460_v32 = vld [vmem:[#allocation41_spill] sm:$0xff] }
  0xe8   :  { %v939_v14 = vmul.f32 %v3455_v55, %v3444_v46  ;;  %v940_v10 = vmul.f32 %v3456_v12, %v3444_v46  ;;  %v941_v28 = vmul.f32 %v3457_v8, %v3444_v46  ;;  %v537_v58 = vadd.f32 %v536_v54, %v530_v9  ;;  %v3462_v12 = vld [vmem:[#allocation33_spill] sm:$0xff] }
  0xe9   :  { %v943_v1 = vadd.f32 %v935_v50, %v3459_v43  ;;  %v944_v35 = vadd.f32 %v936_v20, %v3460_v32  ;;  %v945_v56 = vadd.f32 %v937_v2, %v3461_v34  ;;  %v946_v55 = vadd.f32 %v938_v24, %v898_v19 }
  0xea   :  { %v947_v41 = vadd.f32 %v939_v14, %v899_v62  ;;  %v948_v13 = vadd.f32 %v940_v10, %v900_v21  ;;  %v949_v57 = vadd.f32 %v941_v28, %v901_v7  ;;  %v538_v3 = vadd.f32 %v537_v58, %v531_v52 }
  0xeb   :  { %v3464_v31 = vrot.slane %v3445_v39, %v3463_v4  ;;  %v3465_v9 = vrot.slane %v3448_v16, %v3463_v4  ;;  %v3466_v15 = vrot.slane %v3450_v26, %v3463_v4  ;;  %v3467_v19 = vrot.slane %v3452_v0, %v3463_v4 }
  0xec   :  { %v3468_v21 = vrot.slane %v2083_v48, %v3463_v4  ;;  %v3469_v7 = vrot.slane %v2094_v5, %v3463_v4  ;;  %v3470_v50 = vrot.slane %v3437_v30, %v3463_v4  ;;  %v539_v20 = vadd.f32 %v538_v3, %v532_v11 }
  0xed   :  { %v982_v38 = vmul.f32 %v3464_v31, %v3462_v12  ;;  %v983_v46 = vmul.f32 %v3465_v9, %v3462_v12  ;;  %v984_v34 = vmul.f32 %v3466_v15, %v3462_v12  ;;  %v985_v62 = vmul.f32 %v3467_v19, %v3462_v12 }
  0xee   :  { %v986_v31 = vmul.f32 %v3468_v21, %v3462_v12  ;;  %v987_v52 = vmul.f32 %v3469_v7, %v3462_v12  ;;  %v988_v54 = vmul.f32 %v3470_v50, %v3462_v12  ;;  %v3471_v2 = vrot.slane %v3440_v27, %v3463_v4 }
  0xef   :  { %v990_v14 = vadd.f32 %v982_v38, %v942_v45  ;;  %v991_v10 = vadd.f32 %v983_v46, %v943_v1  ;;  %v992_v8 = vadd.f32 %v984_v34, %v944_v35  ;;  %v993_v28 = vadd.f32 %v985_v62, %v945_v56 }
  0xf0   :  { %v989_v24 = vmul.f32 %v3471_v2, %v3462_v12  ;;  %v994_v40 = vadd.f32 %v986_v31, %v946_v55  ;;  %v995_v58 = vadd.f32 %v987_v52, %v947_v41  ;;  %v540_v43 = vadd.f32 %v539_v20, %v533_v36 }
  0xf1   :  { %v996_v32 = vadd.f32 %v988_v54, %v948_v13  ;;  %v3472_v15 = vrot.slane %v3445_v39, %v1901_v17  ;;  %v3473_v3 = vrot.slane %v3448_v16, %v1901_v17  ;;  %v3474_v35 = vrot.slane %v3450_v26, %v1901_v17 }
  0xf2   :  { %v997_v9 = vadd.f32 %v989_v24, %v949_v57  ;;  %v3475_v41 = vrot.slane %v3452_v0, %v1901_v17  ;;  %v3476_v13 = vrot.slane %v2083_v48, %v1901_v17  ;;  %541 = vadd.xlane.f32.xlu0 %v540_v43  ;;  %v3477_v36 = vrot.slane %v2094_v5, %v1901_v17 }
  0xf3   :  { %v1030_v19 = vmul.f32 %v3472_v15, %v2332_v47  ;;  %v1031_v4 = vmul.f32 %v3473_v3, %v2332_v47  ;;  %v1032_v56 = vmul.f32 %v3474_v35, %v2332_v47  ;;  %v3478_v1 = vrot.slane %v3437_v30, %v1901_v17 }
  0xf4   :  { %v1033_v57 = vmul.f32 %v3475_v41, %v2332_v47  ;;  %v1034_v11 = vmul.f32 %v3476_v13, %v2332_v47  ;;  %v1035_v45 = vmul.f32 %v3477_v36, %v2332_v47  ;;  %v3479_v12 = vrot.slane %v3440_v27, %v1901_v17 }
  0xf5   :  { %v1036_v55 = vmul.f32 %v3478_v1, %v2332_v47  ;;  %v1038_v46 = vadd.f32 %v1030_v19, %v990_v14  ;;  %v1039_v34 = vadd.f32 %v1031_v4, %v991_v10  ;;  %v1040_v62 = vadd.f32 %v1032_v56, %v992_v8 }
  0xf6   :  { %v1037_v38 = vmul.f32 %v3479_v12, %v2332_v47  ;;  %v1041_v21 = vadd.f32 %v1033_v57, %v993_v28  ;;  %v1042_v31 = vadd.f32 %v1034_v11, %v994_v40  ;;  %v1043_v7 = vadd.f32 %v1035_v45, %v995_v58 }
  0xf7   :  { %v1044_v52 = vadd.f32 %v1036_v55, %v996_v32  ;;  %v3480_v54 = vrot.slane %v3445_v39, %v1903_v18  ;;  %v3481_v2 = vrot.slane %v3448_v16, %v1903_v18  ;;  %v3482_v17 = vrot.slane %v3450_v26, %v1903_v18 }
  0xf8   :  { %v1045_v50 = vadd.f32 %v1037_v38, %v997_v9  ;;  %v3483_v14 = vrot.slane %v3452_v0, %v1903_v18  ;;  %v3484_v8 = vrot.slane %v2083_v48, %v1903_v18  ;;  %v3485_v40 = vrot.slane %v2094_v5, %v1903_v18 }
  0xf9   :  { %v1078_v20 = vmul.f32 %v3480_v54, %v2404_v23  ;;  %v1079_v24 = vmul.f32 %v3481_v2, %v2404_v23  ;;  %v1080_v47 = vmul.f32 %v3482_v17, %v2404_v23  ;;  %v3486_v43 = vrot.slane %v3437_v30, %v1903_v18 }
  0xfa   :  { %v1081_v10 = vmul.f32 %v3483_v14, %v2404_v23  ;;  %v1082_v28 = vmul.f32 %v3484_v8, %v2404_v23  ;;  %v1083_v58 = vmul.f32 %v3485_v40, %v2404_v23  ;;  %v3487_v9 = vrot.slane %v3440_v27, %v1903_v18 }
  0xfb   :  { %v1084_v32 = vmul.f32 %v3486_v43, %v2404_v23  ;;  %v1086_v19 = vadd.f32 %v1078_v20, %v1038_v46  ;;  %v1087_v3 = vadd.f32 %v1079_v24, %v1039_v34  ;;  %v1088_v4 = vadd.f32 %v1080_v47, %v1040_v62 }
  0xfc   :  { %v1085_v15 = vmul.f32 %v3487_v9, %v2404_v23  ;;  %v1089_v35 = vadd.f32 %v1081_v10, %v1041_v21  ;;  %v1090_v56 = vadd.f32 %v1082_v28, %v1042_v31  ;;  %v1091_v41 = vadd.f32 %v1083_v58, %v1043_v7 }
  0xfd   :  { %v1092_v57 = vadd.f32 %v1084_v32, %v1044_v52  ;;  %v3488_v11 = vrot.slane %v3445_v39, %v1917_v25  ;;  %v3489_v45 = vrot.slane %v3448_v16, %v1917_v25  ;;  %v3490_v18 = vrot.slane %v3450_v26, %v1917_v25 }
  0xfe   :  { %v1093_v13 = vadd.f32 %v1085_v15, %v1045_v50  ;;  %v3491_v55 = vrot.slane %v3452_v0, %v1917_v25  ;;  %v3492_v38 = vrot.slane %v2083_v48, %v1917_v25  ;;  %v3493_v34 = vrot.slane %v2094_v5, %v1917_v25 }
  0xff   :  { %v1126_v36 = vmul.f32 %v3488_v11, %v2406_v22  ;;  %v1127_v1 = vmul.f32 %v3489_v45, %v2406_v22  ;;  %v1128_v23 = vmul.f32 %v3490_v18, %v2406_v22  ;;  %v3494_v21 = vrot.slane %v3437_v30, %v1917_v25  ;;  %v3507_v45 = vld [vmem:[#allocation32_spill] sm:$0xff]  ;;  %v3508_v18 = vld [vmem:[#allocation34_spill] sm:$0xff] }
 0x100   :  { %v1129_v12 = vmul.f32 %v3491_v55, %v2406_v22  ;;  %v1130_v46 = vmul.f32 %v3492_v38, %v2406_v22  ;;  %v1131_v62 = vmul.f32 %v3493_v34, %v2406_v22  ;;  %v3495_v7 = vrot.slane %v3440_v27, %v1917_v25  ;;  %v2828_v55 = vld [vmem:[%s3321_s5 + $0x48] sm:$0xff]  ;;  %v3510_v34 = vld [vmem:[#allocation36_spill] sm:$0xff] }
 0x101   :  { %v1132_v31 = vmul.f32 %v3494_v21, %v2406_v22  ;;  %v1134_v50 = vadd.f32 %v1126_v36, %v1086_v19  ;;  %v1135_v54 = vadd.f32 %v1127_v1, %v1087_v3  ;;  %v1136_v20 = vadd.f32 %v1128_v23, %v1088_v4  ;;  %v3505_v36 = vld [vmem:[#allocation30_spill] sm:$0xff]  ;;  %v3509_v38 = vld [vmem:[#allocation35_spill] sm:$0xff]  ;;  %v3511_v21 = vld [vmem:[#allocation37_spill] sm:$0xff] }
 0x102   :  { %v1133_v52 = vmul.f32 %v3495_v7, %v2406_v22  ;;  %v1137_v2 = vadd.f32 %v1129_v12, %v1089_v35  ;;  %v1138_v24 = vadd.f32 %v1130_v46, %v1090_v56  ;;  %v1139_v17 = vadd.f32 %v1131_v62, %v1091_v41  ;;  %v2833_v12 = vld [vmem:[%s3321_s5 + $0x50] sm:$0xff] }
 0x103   :  { %v1140_v47 = vadd.f32 %v1132_v31, %v1092_v57  ;;  %v3496_v10 = vrot.slane %v3445_v39, %v1925_v29  ;;  %v3497_v28 = vrot.slane %v3448_v16, %v1925_v29  ;;  %v3498_v25 = vrot.slane %v3450_v26, %v1925_v29 }
 0x104   :  { %v1141_v14 = vadd.f32 %v1133_v52, %v1093_v13  ;;  %v3499_v58 = vrot.slane %v3452_v0, %v1925_v29  ;;  %v3500_v39 = vrot.slane %v2083_v48, %v1925_v29  ;;  %v3501_v16 = vrot.slane %v2094_v5, %v1925_v29  ;;  %v3504_v5 = vld [vmem:[#allocation29_spill] sm:$0xff] }
 0x105   :  { %v1174_v8 = vmul.f32 %v3496_v10, %v2432_v37  ;;  %v1175_v40 = vmul.f32 %v3497_v28, %v2432_v37  ;;  %v1176_v22 = vmul.f32 %v3498_v25, %v2432_v37  ;;  %v3502_v26 = vrot.slane %v3437_v30, %v1925_v29  ;;  %v2815_v30 = vld [vmem:[%s3321_s5 + $0x40] sm:$0xff] }
 0x106   :  { %v1177_v43 = vmul.f32 %v3499_v58, %v2432_v37  ;;  %v1178_v32 = vmul.f32 %v3500_v39, %v2432_v37  ;;  %v1179_v9 = vmul.f32 %v3501_v16, %v2432_v37  ;;  %v3503_v0 = vrot.slane %v3440_v27, %v1925_v29 }
 0x107   :  { %v1180_v15 = vmul.f32 %v3502_v26, %v2432_v37  ;;  %v1182_v3 = vadd.f32 %v1174_v8, %v1134_v50  ;;  %v1183_v4 = vadd.f32 %v1175_v40, %v1135_v54  ;;  %v1184_v35 = vadd.f32 %v1176_v22, %v1136_v20  ;;  %v2844_v20 = vld [vmem:[%s3321_s5 + $0x58] sm:$0xff]  ;;  %v2858_v22 = vld [vmem:[%s3321_s5 + $0x68] sm:$0xff] }
 0x108   :  { %v1181_v19 = vmul.f32 %v3503_v0, %v2432_v37  ;;  %v1185_v48 = vadd.f32 %v1177_v43, %v1137_v2  ;;  %v1186_v56 = vadd.f32 %v1178_v32, %v1138_v24  ;;  %v1187_v41 = vadd.f32 %v1179_v9, %v1139_v17  ;;  %v3506_v37 = vld [vmem:[#allocation31_spill] sm:$0xff] }
 0x109   :  { %v1188_v57 = vadd.f32 %v1180_v15, %v1140_v47  ;;  %v1222_v11 = vmul.f32 %v3504_v5, %v2466_v51  ;;  %v1223_v29 = vmul.f32 %v3505_v36, %v2466_v51  ;;  %v1224_v27 = vmul.f32 %v3506_v37, %v2466_v51  ;;  %v2850_v47 = vld [vmem:[%s3321_s5 + $0x60] sm:$0xff]  ;;  %v2872_v15 = vld [vmem:[%s3321_s5 + $0x70] sm:$0xff] }
 0x10a   :  { %v1189_v13 = vadd.f32 %v1181_v19, %v1141_v14  ;;  %v1225_v1 = vmul.f32 %v3507_v45, %v2466_v51  ;;  %v1226_v23 = vmul.f32 %v3508_v18, %v2466_v51  ;;  %v1227_v46 = vmul.f32 %v3509_v38, %v2466_v51 }
 0x10b   :  { %v1228_v62 = vmul.f32 %v3510_v34, %v2466_v51  ;;  %v1229_v31 = vmul.f32 %v3511_v21, %v2466_v51  ;;  %v1230_v7 = vadd.f32 %v1222_v11, %v1182_v3  ;;  %v1231_v52 = vadd.f32 %v1223_v29, %v1183_v4  ;;  %v2878_v4 = vld [vmem:[%s3321_s5 + $0x78] sm:$0xff]  ;;  %s107_s5 = sld [smem:[#allocation2]] }
 0x10c   :  { %v1232_v50 = vadd.f32 %v1224_v27, %v1184_v35  ;;  %v1233_v54 = vadd.f32 %v1225_v1, %v1185_v48  ;;  %v1234_v2 = vadd.f32 %v1226_v23, %v1186_v56  ;;  %v1235_v24 = vadd.f32 %v1227_v46, %v1187_v41 }
 0x10d   :  { %v1238_v17 = vsub.f32 %v1230_v7, %v2815_v30  ;;  %v1236_v14 = vadd.f32 %v1228_v62, %v1188_v57  ;;  %v1237_v51 = vadd.f32 %v1229_v31, %v1189_v13  ;;  %v1239_v10 = vsub.f32 %v1231_v52, %v2828_v55 }
 0x10e   :  { %v1240_v8 = vsub.f32 %v1232_v50, %v2833_v12  ;;  %v1241_v40 = vsub.f32 %v1233_v54, %v2844_v20  ;;  %v1242_v58 = vsub.f32 %v1234_v2, %v2850_v47  ;;  %v2861_v39 = vadd.f32 %v1231_v52, %v1230_v7 }
 0x10f   :  { %v1246_v28 = vmul.f32 %v1238_v17, %v1238_v17  ;;  %v1247_v25 = vmul.f32 %v1239_v10, %v1239_v10  ;;  %v2863_v16 = vadd.f32 %v1233_v54, %v1232_v50  ;;  %v2865_v9 = vadd.f32 %v1235_v24, %v1234_v2 }
 0x110   :  { %v1248_v43 = vmul.f32 %v1240_v8, %v1240_v8  ;;  %v2867_v26 = vadd.f32 %v1237_v51, %v1236_v14  ;;  %v1243_v0 = vsub.f32 %v1235_v24, %v2858_v22  ;;  %v1249_v19 = vmul.f32 %v1241_v40, %v1241_v40 }
 0x111   :  { %v1254_v32 = vadd.f32 %v1247_v25, %v1246_v28  ;;  %v1244_v35 = vsub.f32 %v1236_v14, %v2872_v15  ;;  %v1250_v48 = vmul.f32 %v1242_v58, %v1242_v58  ;;  %v1245_v41 = vsub.f32 %v1237_v51, %v2878_v4 }
 0x112   :  { %v1251_v57 = vmul.f32 %v1243_v0, %v1243_v0  ;;  %v551_v28 = vsub.f32 %v2002_v59, %v2489_v6  ;;  %v552_v40 = vsub.f32 %v2006_v60, %v2494_v63  ;;  %v553_v25 = vsub.f32 %v2010_v61, %v2499_v53  ;;  %v99_v59 = vld [vmem:[%s3323_s7] sm:$0xff]  ;;  %v100_v60 = vld [vmem:[%s3323_s7 + $0x8] sm:$0xff] }
 0x113   :  { %v1255_v3 = vadd.f32 %v1254_v32, %v1248_v43  ;;  %v1252_v11 = vmul.f32 %v1244_v35, %v1244_v35  ;;  %v1253_v27 = vmul.f32 %v1245_v41, %v1245_v41  ;;  %v559_v58 = vstv %s107_s5  ;;  %v101_v43 = vld [vmem:[%s3323_s7 + $0x10] sm:$0xff]  ;;  %v3513_v41 = vld [vmem:[#allocation26_spill] sm:$0xff] }
 0x114   :  { %v568_v32 = vstv %s108_s1  ;;  %v554_v0 = vsub.f32 %v2112_v42, %v2559_v44  ;;  %v560_v61 = vmul.f32 %v559_v58, %v551_v28  ;;  %v562_v35 = vmul.f32 %v559_v58, %v553_v25  ;;  %v3512_v42 = vld [vmem:[#allocation43_spill] sm:$0xff]  ;;  %s1646_s1 = sld [smem:[#allocation7 + $0x81]] }
 0x115   :  { %v1256_v56 = vadd.f32 %v1255_v3, %v1249_v19  ;;  %v102_v19 = vld [vmem:[%s3323_s7 + $0x18] sm:$0xff]  ;;  %v561_v3 = vmul.f32 %v559_v58, %v552_v40 }
 0x117   :  { %v1257_v13 = vadd.f32 %v1256_v56, %v1250_v48  ;;  %v571_v48 = vmul.f32 %v568_v32, %v101_v43  ;;  %v555_v56 = vsub.f32 %v2122_v33, %v2564_v49  ;;  %v3514_v33 = vld [vmem:[#allocation44_spill] sm:$0xff] }
 0x119   :  { %v1258_v29 = vadd.f32 %v1257_v13, %v1251_v57  ;;  %v556_v57 = vsub.f32 %v3513_v41, %v3512_v42  ;;  %v103_v13 = vld [vmem:[%s3323_s7 + $0x20] sm:$0xff] }
 0x11b   :  { %v1259_v1 = vadd.f32 %v1258_v29, %v1252_v11  ;;  %v104_v11 = vld [vmem:[%s3323_s7 + $0x28] sm:$0xff]  ;;  %v563_v29 = vmul.f32 %v559_v58, %v554_v0 }
 0x11d   :  { %v2882_v23 = vadd.f32 %v1259_v1, %v1253_v27  ;;  %v572_v27 = vmul.f32 %v568_v32, %v102_v19  ;;  %v569_v1 = vmul.f32 %v568_v32, %v99_v59 }
 0x11f   :  { %v577_v28 = vadd.f32 %v569_v1, %v560_v61 }
 0x121   :  { %v2945_v61 = vadd.f32 %v577_v28, %v2489_v6 }
 0x15e   :  { %v595_v46 = vpop.xlane.xlu1 %594 }
 0x15f   :  { %v596_v62 = vrot.slane %v595_v46, 4 }
 0x161   :  { %v597_v31 = vadd.f32 %v596_v62, %v595_v46  ;;  %v570_v46 = vmul.f32 %v568_v32, %v100_v60  ;;  %v3515_v62 = vld [vmem:[#allocation27_spill] sm:$0xff] }
 0x163   :  { %v598_v7 = vrot.slane %v597_v31, 2  ;;  %v578_v40 = vadd.f32 %v570_v46, %v561_v3 }
 0x165   :  { %v599_v2 = vadd.f32 %v598_v7, %v597_v31  ;;  %v557_v31 = vsub.f32 %v3515_v62, %v3514_v33  ;;  %v3516_v7 = vld [vmem:[#allocation45_spill] sm:$0xff]  ;;  %v2948_v3 = vadd.f32 %v578_v40, %v2494_v63  ;;  %v621_v62 = vstv %s1594_s6  ;;  %s1604_s6 = sld [smem:[#allocation7 + $0x2]] }
 0x167   :  { %v600_v14 = vrot.slane %v599_v2, 1  ;;  %v566_v25 = vmul.f32 %v559_v58, %v557_v31 }
 0x169   :  { %v601_v8 = vadd.f32 %v600_v14, %v599_v2  ;;  %v565_v2 = vmul.f32 %v559_v58, %v556_v57  ;;  %v2922_v14 = vadd.f32 %v571_v48, %v562_v35 }
 0x16b   :  { %v2938_v35 = vadd.f32 %v2922_v14, %v2499_v53 }
 0x17b   :  { %v542_v52 = vpop.xlane.xlu0 %541 }
 0x17c   :  { %v543_v50 = vrot.slane %v542_v52, 4 }
 0x17e   :  { %v544_v54 = vadd.f32 %v543_v50, %v542_v52  ;;  %v3517_v52 = vld [vmem:[#allocation28_spill] sm:$0xff] }
 0x17f   :  { %v558_v50 = vsub.f32 %v3517_v52, %v3516_v7 }
 0x180   :  { %v545_v24 = vrot.slane %v544_v54, 2 }
 0x181   :  { %v567_v43 = vmul.f32 %v559_v58, %v558_v50 }
 0x182   :  { %v546_v17 = vadd.f32 %v545_v24, %v544_v54  ;;  %v564_v54 = vmul.f32 %v559_v58, %v555_v56  ;;  %v573_v24 = vmul.f32 %v568_v32, %v103_v13  ;;  %v605_v58 = vstv %s2914_s4 }
 0x183   :  { %v606_v6 = vmul.f32 %v605_v58, %v2945_v61  ;;  %v607_v63 = vmul.f32 %v605_v58, %v2948_v3 }
 0x184   :  { %v547_v51 = vrot.slane %v546_v17, 1  ;;  %v2932_v59 = vadd.f32 %v573_v24, %v564_v54 }
 0x186   :  { %v548_v10 = vadd.f32 %v547_v51, %v546_v17  ;;  %v574_v17 = vmul.f32 %v568_v32, %v104_v11  ;;  %v105_v51 = vld [vmem:[%s3323_s7 + $0x30] sm:$0xff]  ;;  %v2958_v53 = vadd.f32 %v2932_v59, %v2564_v49  ;;  %v615_v11 = vstv %s1593_s16  ;;  %s1603_s16 = sld [smem:[#allocation8 + $0x103]] }
 0x187   :  { %v575_v0 = vmul.f32 %v568_v32, %v105_v51 }
 0x188   :  { %1663 = vpush %v548_v10  ;;  %v106_v10 = vld [vmem:[%s3323_s7 + $0x38] sm:$0xff]  ;;  %v2934_v60 = vadd.f32 %v574_v17, %v565_v2  ;;  %v616_v1 = vmul.f32 %v615_v11, %v2958_v53 }
 0x189   :  { %1665 = vpush %v601_v8  ;;  %v2930_v8 = vadd.f32 %v572_v27, %v563_v29  ;;  %v576_v19 = vmul.f32 %v568_v32, %v106_v10  ;;  %v609_v32 = vstv %s2916_s11  ;;  %v2952_v56 = vadd.f32 %v575_v0, %v566_v25 }
 0x18a   :  { %v610_v57 = vmul.f32 %v609_v32, %v2938_v35 }
 0x18b   :  { %v2942_v48 = vadd.f32 %v2930_v8, %v2559_v44  ;;  %v2954_v41 = vadd.f32 %v576_v19, %v567_v43  ;;  %v2962_v44 = vadd.f32 %v2934_v60, %v3512_v42  ;;  %v2970_v29 = vadd.f32 %v2952_v56, %v3514_v33 }
 0x18c   :  { %v612_v27 = vadd.f32 %v610_v57, %v606_v6  ;;  %v3518_v57 = vld [vmem:[#allocation24_spill] sm:$0xff] }
 0x18d   :  { %v611_v13 = vmul.f32 %v609_v32, %v2942_v48  ;;  %v2974_v49 = vadd.f32 %v2954_v41, %v3516_v7  ;;  %v617_v46 = vmul.f32 %v615_v11, %v2962_v44  ;;  %v622_v50 = vmul.f32 %v621_v62, %v2970_v29  ;;  %v3520_v11 = vld [vmem:[#allocation46_spill] sm:$0xff] }
 0x18e   :  { %v618_v31 = vadd.f32 %v616_v1, %v612_v27  ;;  %v627_v7 = vstv %s626_s17 }
 0x18f   :  { %v613_v42 = vadd.f32 %v611_v13, %v607_v63  ;;  %v623_v54 = vmul.f32 %v621_v62, %v2974_v49  ;;  %v3519_v13 = vld [vmem:[#allocation25_spill] sm:$0xff] }
 0x190   :  { %v624_v33 = vadd.f32 %v622_v50, %v618_v31 }
 0x191   :  { %v619_v52 = vadd.f32 %v617_v46, %v613_v42 }
 0x192   :  { %v628_v24 = vadd.f32 %v627_v7, %v624_v33 }
 0x193   :  { %v625_v2 = vadd.f32 %v623_v54, %v619_v52 }
 0x195   :  { %v629_v17 = vadd.f32 %v627_v7, %v625_v2 }
 0x1b9   :  { %s2980_s18 = spop %1663 }
 0x1ba   :  { %s1666_s19 = spop %1665 }
 0x1bb   :  { %s603_s20 = smul.f32 0.00048828125, %s1666_s19 }
 0x1bd   :  { %s630_s21 = smul.f32 0.1, %s603_s20 }
 0x1bf   :  { %v631_v51 = vstv %s630_s21 }
 0x1c0   :  { %v632_v10 = vadd.f32 %v631_v51, %v628_v24  ;;  %v633_v25 = vadd.f32 %v631_v51, %v629_v17  ;;  %v2996_v24 = vstv %s1596_s24  ;;  %s1606_s24 = sld [smem:[#allocation8 + $0x181]] }
 0x1c2   :  { %v649_v43 = vsub.f32 %v2945_v61, %v632_v10  ;;  %v650_v0 = vsub.f32 %v2948_v3, %v633_v25  ;;  %v634_v19 = vsub.f32 %v577_v28, %v632_v10  ;;  %v635_v58 = vsub.f32 %v578_v40, %v633_v25 }
 0x1c3   :  { %v670_v10 = vmul.f32 %v2996_v24, %v2938_v35  ;;  %v671_v25 = vmul.f32 %v2996_v24, %v2942_v48 }
 0x1c4   :  { %651 = vst [vmem:[%s3324_s8] sm:$0xff] %v649_v43  ;;  %652 = vst [vmem:[%s3324_s8 + $0x8] sm:$0xff] %v650_v0  ;;  %v636_v32 = vmul.f32 %v634_v19, %v634_v19  ;;  %v637_v6 = vmul.f32 %v635_v58, %v635_v58  ;;  %v3006_v43 = vstv %s1597_s25  ;;  %s1607_s25 = sld [smem:[#allocation8 + $0x182]] }
 0x1c5   :  { %v676_v58 = vmul.f32 %v3006_v43, %v2958_v53 }
 0x1c6   :  { %v638_v63 = vadd.f32 %v637_v6, %v636_v32  ;;  %v677_v32 = vmul.f32 %v3006_v43, %v2962_v44  ;;  %v3012_v6 = vstv %s1598_s26  ;;  %s1608_s26 = sld [smem:[#allocation8 + $0x183]] }
 0x1c8   :  { %639 = vadd.xlane.f32.xlu0 %v638_v63 }
 0x1cc   :  { %654 = vadd.xlane.f32.xlu0 %v3518_v57 }
 0x1d0   :  { %714 = vadd.xlane.f32.xlu0 %v3519_v13  ;;  %v682_v13 = vmul.f32 %v3012_v6, %v2970_v29 }
 0x1d4   :  { %774 = vadd.xlane.f32.xlu0 %v3520_v11  ;;  %v683_v11 = vmul.f32 %v3012_v6, %v2974_v49 }
 0x1d8   :  { %1261 = vadd.xlane.f32.xlu0 %v2882_v23  ;;  %v2994_v23 = vstv %s1595_s23  ;;  %s1605_s23 = sld [smem:[#allocation8 + $0x180]] }
 0x1d9   :  { %v666_v17 = vmul.f32 %v2994_v23, %v2945_v61  ;;  %v667_v51 = vmul.f32 %v2994_v23, %v2948_v3 }
 0x1db   :  { %v672_v0 = vadd.f32 %v670_v10, %v666_v17  ;;  %v673_v19 = vadd.f32 %v671_v25, %v667_v51 }
 0x1dd   :  { %v678_v63 = vadd.f32 %v676_v58, %v672_v0  ;;  %v679_v57 = vadd.f32 %v677_v32, %v673_v19 }
 0x251   :  { %v640_v28 = vpop.xlane.xlu0 %639 }
 0x252   :  { %v641_v40 = vrot.slane %v640_v28, 4 }
 0x254   :  { %v642_v27 = vadd.f32 %v641_v40, %v640_v28  ;;  %v684_v28 = vadd.f32 %v682_v13, %v678_v63  ;;  %v685_v40 = vadd.f32 %v683_v11, %v679_v57 }
 0x255   :  { %v655_v42 = vpop.xlane.xlu0 %654 }
 0x256   :  { %v643_v1 = vrot.slane %v642_v27, 2  ;;  %v656_v46 = vrot.slane %v655_v42, 4 }
 0x258   :  { %v657_v62 = vadd.f32 %v656_v46, %v655_v42  ;;  %v644_v31 = vadd.f32 %v643_v1, %v642_v27  ;;  %v687_v27 = vstv %s1599_s27  ;;  %s1609_s27 = sld [smem:[#allocation7 + $0x3]] }
 0x259   :  { %v688_v42 = vadd.f32 %v687_v27, %v684_v28  ;;  %v689_v1 = vadd.f32 %v687_v27, %v685_v40  ;;  %v715_v51 = vpop.xlane.xlu0 %714  ;;  %v3030_v40 = vstv %s1600_s13  ;;  %v3032_v27 = vstv %s1601_s14 }
 0x25a   :  { %v658_v52 = vrot.slane %v657_v62, 2  ;;  %v645_v50 = vrot.slane %v644_v31, 1  ;;  %v716_v10 = vrot.slane %v715_v51, 4 }
 0x25c   :  { %v646_v54 = vadd.f32 %v645_v50, %v644_v31  ;;  %v659_v33 = vadd.f32 %v658_v52, %v657_v62  ;;  %v717_v25 = vadd.f32 %v716_v10, %v715_v51 }
 0x25e   :  { %1667 = vpush %v646_v54  ;;  %v660_v2 = vrot.slane %v659_v33, 1  ;;  %v718_v0 = vrot.slane %v717_v25, 2 }
 0x260   :  { %v661_v7 = vadd.f32 %v660_v2, %v659_v33 }
 0x262   :  { %1669 = vpush %v661_v7 }
 0x28f   :  { %s3018_s28 = spop %1667 }
 0x293   :  { %s1670_s29 = spop %1669 }
 0x294   :  { %s663_s2 = smul.f32 0.00048828125, %s1670_s29 }
 0x296   :  { %s690_s3 = smul.f32 0.1, %s663_s2 }
 0x298   :  { %v691_v46 = vstv %s690_s3 }
 0x299   :  { %v692_v62 = vadd.f32 %v691_v46, %v688_v42  ;;  %v693_v31 = vadd.f32 %v691_v46, %v689_v1  ;;  %v726_v42 = vmul.f32 %v3030_v40, %v2945_v61  ;;  %v727_v1 = vmul.f32 %v3030_v40, %v2948_v3 }
 0x29a   :  { %v730_v46 = vmul.f32 %v3032_v27, %v2938_v35 }
 0x29b   :  { %v709_v52 = vsub.f32 %v2938_v35, %v692_v62  ;;  %v710_v50 = vsub.f32 %v2942_v48, %v693_v31  ;;  %v694_v54 = vsub.f32 %v2922_v14, %v692_v62  ;;  %v695_v33 = vsub.f32 %v2930_v8, %v693_v31 }
 0x29c   :  { %v719_v8 = vadd.f32 %v718_v0, %v717_v25  ;;  %v731_v62 = vmul.f32 %v3032_v27, %v2942_v48  ;;  %v3042_v31 = vstv %s1602_s15  ;;  %s1634_s15 = sld [smem:[#allocation2 + $0x1]] }
 0x29d   :  { %711 = vst [vmem:[%s3324_s8 + $0x10] sm:$0xff] %v709_v52  ;;  %712 = vst [vmem:[%s3324_s8 + $0x18] sm:$0xff] %v710_v50  ;;  %v696_v2 = vmul.f32 %v694_v54, %v694_v54  ;;  %v697_v7 = vmul.f32 %v695_v33, %v695_v33  ;;  %v732_v52 = vadd.f32 %v730_v46, %v726_v42 }
 0x29e   :  { %v720_v57 = vrot.slane %v719_v8, 1  ;;  %v733_v50 = vadd.f32 %v731_v62, %v727_v1  ;;  %v736_v54 = vmul.f32 %v3042_v31, %v2958_v53  ;;  %v737_v33 = vmul.f32 %v3042_v31, %v2962_v44  ;;  %v775_v62 = vpop.xlane.xlu0 %774 }
 0x29f   :  { %v698_v17 = vadd.f32 %v697_v7, %v696_v2  ;;  %v3048_v2 = vstv %s1603_s16  ;;  %s1635_s16 = sld [smem:[#allocation5 + $0x1]] }
 0x2a0   :  { %v721_v28 = vadd.f32 %v720_v57, %v719_v8  ;;  %v738_v7 = vadd.f32 %v736_v54, %v732_v52  ;;  %v742_v51 = vmul.f32 %v3048_v2, %v2970_v29  ;;  %v743_v10 = vmul.f32 %v3048_v2, %v2974_v49 }
 0x2a1   :  { %699 = vadd.xlane.f32.xlu1 %v698_v17  ;;  %v739_v17 = vadd.f32 %v737_v33, %v733_v50  ;;  %v776_v52 = vrot.slane %v775_v62, 4 }
 0x2a2   :  { %v744_v25 = vadd.f32 %v742_v51, %v738_v7 }
 0x2a3   :  { %v745_v0 = vadd.f32 %v743_v10, %v739_v17  ;;  %v777_v50 = vadd.f32 %v776_v52, %v775_v62 }
 0x2a5   :  { %v778_v54 = vrot.slane %v777_v50, 2 }
 0x32a   :  { %v700_v19 = vpop.xlane.xlu1 %699 }
 0x32b   :  { %v701_v14 = vrot.slane %v700_v19, 4 }
 0x32d   :  { %v702_v58 = vadd.f32 %v701_v14, %v700_v19  ;;  %v747_v19 = vstv %s1604_s6 }
 0x32e   :  { %v748_v14 = vadd.f32 %v747_v19, %v744_v25 }
 0x32f   :  { %v703_v32 = vrot.slane %v702_v58, 2 }
 0x331   :  { %v704_v63 = vadd.f32 %v703_v32, %v702_v58  ;;  %v749_v58 = vadd.f32 %v747_v19, %v745_v0 }
 0x333   :  { %v705_v13 = vrot.slane %v704_v63, 1 }
 0x335   :  { %v706_v11 = vadd.f32 %v705_v13, %v704_v63 }
 0x337   :  { %1671 = vpush %v706_v11 }
 0x338   :  { %1673 = vpush %v721_v28 }
 0x368   :  { %s3054_s17 = spop %1671 }
 0x369   :  { %s1674_s19 = spop %1673  ;;  %s708_s29 = sadd.f32 %s3054_s17, %s3018_s28 }
 0x36a   :  { %s723_s20 = smul.f32 0.00048828125, %s1674_s19  ;;  %s1639_s28 = sld [smem:[#allocation7 + $0x80]] }
 0x36c   :  { %s750_s21 = smul.f32 0.1, %s723_s20 }
 0x36e   :  { %v751_v8 = vstv %s750_s21 }
 0x36f   :  { %v752_v32 = vadd.f32 %v751_v8, %v748_v14  ;;  %v753_v63 = vadd.f32 %v751_v8, %v749_v58  ;;  %v3066_v14 = vstv %s1605_s23  ;;  %v3068_v58 = vstv %s1606_s24 }
 0x370   :  { %v786_v8 = vmul.f32 %v3066_v14, %v2945_v61  ;;  %v3084_v61 = vstv %s1608_s26  ;;  %s3138_s26 = sld [smem:[#allocation8]] }
 0x371   :  { %v769_v57 = vsub.f32 %v2958_v53, %v752_v32  ;;  %v770_v13 = vsub.f32 %v2962_v44, %v753_v63  ;;  %v754_v11 = vsub.f32 %v2932_v59, %v752_v32  ;;  %v755_v28 = vsub.f32 %v2934_v60, %v753_v63 }
 0x372   :  { %v779_v60 = vadd.f32 %v778_v54, %v777_v50  ;;  %v787_v32 = vmul.f32 %v3066_v14, %v2948_v3  ;;  %v790_v63 = vmul.f32 %v3068_v58, %v2938_v35  ;;  %v802_v35 = vmul.f32 %v3084_v61, %v2970_v29 }
 0x373   :  { %771 = vst [vmem:[%s3324_s8 + $0x20] sm:$0xff] %v769_v57  ;;  %772 = vst [vmem:[%s3324_s8 + $0x28] sm:$0xff] %v770_v13  ;;  %v756_v42 = vmul.f32 %v754_v11, %v754_v11  ;;  %v757_v1 = vmul.f32 %v755_v28, %v755_v28  ;;  %v791_v57 = vmul.f32 %v3068_v58, %v2942_v48  ;;  %v3078_v13 = vstv %s1607_s25 }
 0x374   :  { %v780_v10 = vrot.slane %v779_v60, 1  ;;  %v792_v11 = vadd.f32 %v790_v63, %v786_v8  ;;  %v803_v48 = vmul.f32 %v3084_v61, %v2974_v49  ;;  %v807_v50 = vstv %s1609_s27  ;;  %s3140_s27 = sld [smem:[#allocation8 + $0x1]] }
 0x375   :  { %v758_v46 = vadd.f32 %v757_v1, %v756_v42  ;;  %v793_v28 = vadd.f32 %v791_v57, %v787_v32  ;;  %v796_v42 = vmul.f32 %v3078_v13, %v2958_v53  ;;  %v797_v1 = vmul.f32 %v3078_v13, %v2962_v44 }
 0x376   :  { %v781_v19 = vadd.f32 %v780_v10, %v779_v60 }
 0x377   :  { %759 = vadd.xlane.f32.xlu1 %v758_v46  ;;  %v798_v3 = vadd.f32 %v796_v42, %v792_v11  ;;  %v799_v46 = vadd.f32 %v797_v1, %v793_v28 }
 0x379   :  { %v804_v62 = vadd.f32 %v802_v35, %v798_v3  ;;  %v805_v52 = vadd.f32 %v803_v48, %v799_v46 }
 0x37b   :  { %v808_v53 = vadd.f32 %v807_v50, %v804_v62  ;;  %v809_v44 = vadd.f32 %v807_v50, %v805_v52  ;;  %v1273_v62 = vsub.f32 %v3506_v37, %v2833_v12  ;;  %v1274_v52 = vsub.f32 %v3507_v45, %v2844_v20  ;;  %v1628_v50 = vld [vmem:[%s3323_s7 + $0x50] sm:$0xff]  ;;  %v1626_v37 = vld [vmem:[%s3323_s7 + $0x40] sm:$0xff]  ;;  %v1627_v45 = vld [vmem:[%s3323_s7 + $0x48] sm:$0xff] }
 0x400   :  { %v760_v33 = vpop.xlane.xlu1 %759 }
 0x401   :  { %v761_v59 = vrot.slane %v760_v33, 4 }
 0x403   :  { %v762_v7 = vadd.f32 %v761_v59, %v760_v33 }
 0x405   :  { %v763_v17 = vrot.slane %v762_v7, 2 }
 0x407   :  { %v764_v51 = vadd.f32 %v763_v17, %v762_v7 }
 0x409   :  { %v765_v25 = vrot.slane %v764_v51, 1 }
 0x40b   :  { %v766_v0 = vadd.f32 %v765_v25, %v764_v51 }
 0x40d   :  { %1675 = vpush %v766_v0 }
 0x40e   :  { %1677 = vpush %v781_v19 }
 0x43e   :  { %s1676_s2 = spop %1675 }
 0x43f   :  { %s3092_s3 = sadd.f32 %s1676_s2, %s708_s29  ;;  %s1678_s30 = spop %1677 }
 0x440   :  { %s783_s4 = smul.f32 0.00048828125, %s1678_s30  ;;  %s1653_s2 = sld [smem:[#allocation7 + $0x82]] }
 0x442   :  { %s810_s11 = smul.f32 0.1, %s783_s4 }
 0x444   :  { %v811_v54 = vstv %s810_s11  ;;  %s1637_s11 = sld [smem:[#allocation8 + $0x2]] }
 0x445   :  { %v812_v33 = vadd.f32 %v811_v54, %v808_v53  ;;  %v813_v59 = vadd.f32 %v811_v54, %v809_v44  ;;  %v1629_v53 = vld [vmem:[%s3323_s7 + $0x58] sm:$0xff]  ;;  %v1279_v44 = vstv %s1634_s15  ;;  %v1288_v54 = vstv %s1635_s16 }
 0x447   :  { %v829_v7 = vsub.f32 %v2970_v29, %v812_v33  ;;  %v830_v60 = vsub.f32 %v2974_v49, %v813_v59  ;;  %v814_v17 = vsub.f32 %v2952_v56, %v812_v33  ;;  %v815_v51 = vsub.f32 %v2954_v41, %v813_v59  ;;  %v1262_v56 = vpop.xlane.xlu0 %1261 }
 0x448   :  { %v1263_v41 = vrot.slane %v1262_v56, 4  ;;  %v1271_v33 = vsub.f32 %v3504_v5, %v2815_v30  ;;  %v1272_v59 = vsub.f32 %v3505_v36, %v2828_v55  ;;  %v1291_v5 = vmul.f32 %v1628_v50, %v1288_v54  ;;  %v1630_v36 = vld [vmem:[%s3323_s7 + $0x60] sm:$0xff] }
 0x449   :  { %831 = vst [vmem:[%s3324_s8 + $0x30] sm:$0xff] %v829_v7  ;;  %832 = vst [vmem:[%s3324_s8 + $0x38] sm:$0xff] %v830_v60  ;;  %v816_v10 = vmul.f32 %v814_v17, %v814_v17  ;;  %v817_v25 = vmul.f32 %v815_v51, %v815_v51  ;;  %v1275_v7 = vsub.f32 %v3508_v18, %v2850_v47 }
 0x44a   :  { %v1264_v29 = vadd.f32 %v1263_v41, %v1262_v56  ;;  %v1276_v60 = vsub.f32 %v3509_v38, %v2858_v22  ;;  %v1282_v17 = vmul.f32 %v1279_v44, %v1273_v62  ;;  %v1283_v51 = vmul.f32 %v1279_v44, %v1274_v52 }
 0x44b   :  { %v818_v0 = vadd.f32 %v817_v25, %v816_v10  ;;  %v1292_v10 = vmul.f32 %v1629_v53, %v1288_v54  ;;  %v1631_v25 = vld [vmem:[%s3323_s7 + $0x68] sm:$0xff]  ;;  %v1281_v56 = vmul.f32 %v1279_v44, %v1272_v59  ;;  %v1289_v41 = vmul.f32 %v1626_v37, %v1288_v54 }
 0x44c   :  { %v1265_v49 = vrot.slane %v1264_v29, 2  ;;  %v1277_v18 = vsub.f32 %v3510_v34, %v2872_v15  ;;  %v1278_v38 = vsub.f32 %v3511_v21, %v2878_v4  ;;  %v1325_v62 = vstv %s3138_s26 }
 0x44d   :  { %819 = vadd.xlane.f32.xlu1 %v818_v0  ;;  %v1280_v0 = vmul.f32 %v1279_v44, %v1271_v33  ;;  %v3154_v34 = vadd.f32 %v1292_v10, %v1283_v51  ;;  %v1329_v52 = vstv %s3140_s27  ;;  %v1335_v33 = vstv %s1637_s11 }
 0x44e   :  { %v1266_v57 = vadd.f32 %v1265_v49, %v1264_v29  ;;  %v1290_v29 = vmul.f32 %v1627_v45, %v1288_v54  ;;  %v1284_v49 = vmul.f32 %v1279_v44, %v1275_v7 }
 0x450   :  { %v1298_v21 = vadd.f32 %v1290_v29, %v1281_v56 }
 0x451   :  { %1314 = vadd.xlane.f32.xlu1 %v2861_v39  ;;  %v1267_v39 = vrot.slane %v1266_v57, 1 }
 0x453   :  { %v1268_v35 = vadd.f32 %v1267_v39, %v1266_v57  ;;  %v1633_v57 = vld [vmem:[%s3323_s7 + $0x78] sm:$0xff] }
 0x455   :  { %1375 = vadd.xlane.f32.xlu1 %v2863_v16 }
 0x459   :  { %1435 = vadd.xlane.f32.xlu1 %v2865_v9 }
 0x45d   :  { %1495 = vadd.xlane.f32.xlu1 %v2867_v26 }
 0x4d6   :  { %v820_v19 = vpop.xlane.xlu1 %819 }
 0x4d7   :  { %v821_v8 = vrot.slane %v820_v19, 4 }
 0x4d9   :  { %v822_v32 = vadd.f32 %v821_v8, %v820_v19  ;;  %v1285_v19 = vmul.f32 %v1279_v44, %v1276_v60  ;;  %v1293_v8 = vmul.f32 %v1630_v36, %v1288_v54  ;;  %v1347_v36 = vstv %s1639_s28 }
 0x4da   :  { %v1315_v63 = vpop.xlane.xlu1 %1314 }
 0x4db   :  { %v823_v11 = vrot.slane %v822_v32, 2  ;;  %v1316_v28 = vrot.slane %v1315_v63, 4 }
 0x4dd   :  { %v1317_v42 = vadd.f32 %v1316_v28, %v1315_v63  ;;  %v824_v1 = vadd.f32 %v823_v11, %v822_v32  ;;  %v1294_v32 = vmul.f32 %v1631_v25, %v1288_v54  ;;  %v1632_v63 = vld [vmem:[%s3323_s7 + $0x70] sm:$0xff]  ;;  %v3152_v11 = vadd.f32 %v1291_v5, %v1282_v17  ;;  %s1638_s7 = sld [smem:[#allocation8 + $0x3]] }
 0x4de   :  { %v1297_v28 = vadd.f32 %v1289_v41, %v1280_v0  ;;  %v1295_v39 = vmul.f32 %v1632_v63, %v1288_v54 }
 0x4df   :  { %v1318_v3 = vrot.slane %v1317_v42, 2  ;;  %v825_v16 = vrot.slane %v824_v1, 1 }
 0x4e1   :  { %v826_v46 = vadd.f32 %v825_v16, %v824_v1  ;;  %v1319_v9 = vadd.f32 %v1318_v3, %v1317_v42  ;;  %v1286_v42 = vmul.f32 %v1279_v44, %v1277_v18  ;;  %v1287_v1 = vmul.f32 %v1279_v44, %v1278_v38 }
 0x4e2   :  { %v1296_v3 = vmul.f32 %v1633_v57, %v1288_v54  ;;  %v3156_v16 = vadd.f32 %v1293_v8, %v1284_v49  ;;  %v1376_v57 = vpop.xlane.xlu1 %1375 }
 0x4e3   :  { %1679 = vpush %v826_v46  ;;  %v1320_v26 = vrot.slane %v1319_v9, 1  ;;  %v3158_v46 = vadd.f32 %v1294_v32, %v1285_v19  ;;  %v3176_v50 = vadd.f32 %v1295_v39, %v1286_v42  ;;  %v1341_v60 = vstv %s1638_s7 }
 0x4e4   :  { %1681 = vpush %v1268_v35  ;;  %v3166_v35 = vadd.f32 %v2844_v20, %v3154_v34  ;;  %v3178_v53 = vadd.f32 %v1296_v3, %v1287_v1  ;;  %v1377_v42 = vrot.slane %v1376_v57, 4 }
 0x4e5   :  { %v1321_v48 = vadd.f32 %v1320_v26, %v1319_v9  ;;  %v3162_v9 = vadd.f32 %v2833_v12, %v3152_v11  ;;  %v3169_v26 = vadd.f32 %v2815_v30, %v1297_v28  ;;  %v3182_v12 = vadd.f32 %v2850_v47, %v3156_v16 }
 0x4e6   :  { %v3186_v20 = vadd.f32 %v2858_v22, %v3158_v46  ;;  %v1331_v54 = vmul.f32 %v1329_v52, %v3166_v35  ;;  %v3194_v59 = vadd.f32 %v2872_v15, %v3176_v50  ;;  %v3198_v47 = vadd.f32 %v2878_v4, %v3178_v53 }
 0x4e7   :  { %1683 = vpush %v1321_v48  ;;  %v3172_v48 = vadd.f32 %v2828_v55, %v1298_v21  ;;  %v1326_v30 = vmul.f32 %v1325_v62, %v3169_v26  ;;  %v1330_v44 = vmul.f32 %v1329_v52, %v3162_v9  ;;  %v1336_v45 = vmul.f32 %v1335_v33, %v3182_v12 }
 0x4e8   :  { %v1337_v7 = vmul.f32 %v1335_v33, %v3186_v20  ;;  %v1342_v5 = vmul.f32 %v1341_v60, %v3194_v59  ;;  %v1343_v10 = vmul.f32 %v1341_v60, %v3198_v47  ;;  %v1378_v1 = vadd.f32 %v1377_v42, %v1376_v57 }
 0x4e9   :  { %v1327_v55 = vmul.f32 %v1325_v62, %v3172_v48  ;;  %v1332_v22 = vadd.f32 %v1330_v44, %v1326_v30 }
 0x4ea   :  { %v1379_v39 = vrot.slane %v1378_v1, 2 }
 0x4eb   :  { %v1333_v37 = vadd.f32 %v1331_v54, %v1327_v55  ;;  %v1338_v17 = vadd.f32 %v1336_v45, %v1332_v22  ;;  %v1387_v22 = vmul.f32 %v3169_v26, %v2994_v23  ;;  %v1391_v45 = vmul.f32 %v3162_v9, %v2996_v24 }
 0x4ed   :  { %v1339_v51 = vadd.f32 %v1337_v7, %v1333_v37  ;;  %v1344_v15 = vadd.f32 %v1342_v5, %v1338_v17  ;;  %v1388_v37 = vmul.f32 %v3172_v48, %v2994_v23  ;;  %v1392_v7 = vmul.f32 %v3166_v35, %v2996_v24 }
 0x4ee   :  { %v1393_v60 = vadd.f32 %v1391_v45, %v1387_v22  ;;  %v1398_v5 = vmul.f32 %v3186_v20, %v3006_v43  ;;  %v1403_v23 = vmul.f32 %v3194_v59, %v3012_v6  ;;  %v1408_v24 = vstv %s1646_s1 }
 0x4ef   :  { %v1345_v4 = vadd.f32 %v1343_v10, %v1339_v51  ;;  %v1348_v25 = vadd.f32 %v1347_v36, %v1344_v15  ;;  %v1394_v17 = vadd.f32 %v1392_v7, %v1388_v37  ;;  %v1397_v51 = vmul.f32 %v3182_v12, %v3006_v43 }
 0x4f0   :  { %v1452_v22 = vmul.f32 %v3166_v35, %v3032_v27  ;;  %v1457_v7 = vmul.f32 %v3182_v12, %v3042_v31 }
 0x4f1   :  { %v1349_v0 = vadd.f32 %v1347_v36, %v1345_v4  ;;  %v1399_v10 = vadd.f32 %v1397_v51, %v1393_v60  ;;  %v1400_v15 = vadd.f32 %v1398_v5, %v1394_v17  ;;  %v1404_v4 = vmul.f32 %v3198_v47, %v3012_v6 }
 0x4f2   :  { %v1458_v60 = vmul.f32 %v3186_v20, %v3042_v31  ;;  %v1464_v5 = vmul.f32 %v3198_v47, %v3048_v2 }
 0x4f3   :  { %v1405_v36 = vadd.f32 %v1403_v23, %v1399_v10 }
 0x514   :  { %s3204_s12 = spop %1679 }
 0x515   :  { %s828_s13 = sadd.f32 %s3204_s12, %s3092_s3  ;;  %s1682_s14 = spop %1681 }
 0x516   :  { %s1270_s15 = sadd.f32 %s1682_s14, %s2980_s18  ;;  %s1809_s3 = smov [#allocation10]  }
 0x518   :  { %s1684_s16 = spop %1683  ;;  %s1557_s6 = smul.f32 6.1035156e-05, %s1270_s15 }
 0x519   :  { %s1323_s17 = smul.f32 0.00048828125, %s1684_s16  ;;  %s1660_s16 = sld [smem:[#allocation7 + $0x83]] }
 0x51a   :  { %1559 = sst [smem:[#allocation11]] %s1557_s6 }
 0x51b   :  { %s1350_s19 = smul.f32 0.1, %s1323_s17 }
 0x51d   :  { %v1351_v56 = vstv %s1350_s19 }
 0x51e   :  { %v1352_v41 = vadd.f32 %v1351_v56, %v1348_v25  ;;  %v1353_v29 = vadd.f32 %v1351_v56, %v1349_v0  ;;  %v1406_v25 = vadd.f32 %v1404_v4, %v1400_v15  ;;  %v1409_v0 = vadd.f32 %v1408_v24, %v1405_v36 }
 0x520   :  { %v1369_v18 = vsub.f32 %v3169_v26, %v1352_v41  ;;  %v1370_v38 = vsub.f32 %v3172_v48, %v1353_v29  ;;  %v1354_v49 = vsub.f32 %v1297_v28, %v1352_v41  ;;  %v1355_v19 = vsub.f32 %v1298_v21, %v1353_v29 }
 0x521   :  { %v1380_v21 = vadd.f32 %v1379_v39, %v1378_v1  ;;  %v1410_v43 = vadd.f32 %v1408_v24, %v1406_v25 }
 0x522   :  { %1640 = vst [vmem:[%s3324_s8 + $0x40] sm:$0xff] %v1369_v18  ;;  %1641 = vst [vmem:[%s3324_s8 + $0x48] sm:$0xff] %v1370_v38  ;;  %v1356_v8 = vmul.f32 %v1354_v49, %v1354_v49  ;;  %v1357_v32 = vmul.f32 %v1355_v19, %v1355_v19 }
 0x523   :  { %v1381_v55 = vrot.slane %v1380_v21, 1 }
 0x524   :  { %v1358_v63 = vadd.f32 %v1357_v32, %v1356_v8 }
 0x525   :  { %v1382_v33 = vadd.f32 %v1381_v55, %v1380_v21 }
 0x526   :  { %1359 = vadd.xlane.f32.xlu0 %v1358_v63  ;;  %v1436_v63 = vpop.xlane.xlu1 %1435 }
 0x527   :  { %v1437_v57 = vrot.slane %v1436_v63, 4 }
 0x529   :  { %v1438_v42 = vadd.f32 %v1437_v57, %v1436_v63 }
 0x52b   :  { %v1439_v1 = vrot.slane %v1438_v42, 2 }
 0x5af   :  { %v1360_v3 = vpop.xlane.xlu0 %1359 }
 0x5b0   :  { %v1361_v62 = vrot.slane %v1360_v3, 4 }
 0x5b2   :  { %v1362_v28 = vadd.f32 %v1361_v62, %v1360_v3 }
 0x5b4   :  { %v1363_v52 = vrot.slane %v1362_v28, 2 }
 0x5b6   :  { %v1364_v30 = vadd.f32 %v1363_v52, %v1362_v28 }
 0x5b8   :  { %v1365_v44 = vrot.slane %v1364_v30, 1 }
 0x5ba   :  { %v1366_v54 = vadd.f32 %v1365_v44, %v1364_v30  ;;  %v1447_v44 = vmul.f32 %v3169_v26, %v3030_v40 }
 0x5bc   :  { %1685 = vpush %v1366_v54  ;;  %v1448_v54 = vmul.f32 %v3172_v48, %v3030_v40  ;;  %v1463_v40 = vmul.f32 %v3194_v59, %v3048_v2 }
 0x5bd   :  { %1687 = vpush %v1382_v33  ;;  %v1451_v33 = vmul.f32 %v3162_v9, %v3032_v27  ;;  %v1468_v27 = vstv %s1653_s2 }
 0x5be   :  { %v1454_v45 = vadd.f32 %v1452_v22, %v1448_v54 }
 0x5bf   :  { %v1453_v37 = vadd.f32 %v1451_v33, %v1447_v44 }
 0x5c0   :  { %v1460_v51 = vadd.f32 %v1458_v60, %v1454_v45 }
 0x5c1   :  { %v1459_v17 = vadd.f32 %v1457_v7, %v1453_v37 }
 0x5c2   :  { %v1466_v15 = vadd.f32 %v1464_v5, %v1460_v51 }
 0x5c3   :  { %v1465_v10 = vadd.f32 %v1463_v40, %v1459_v17 }
 0x5c4   :  { %v1470_v31 = vadd.f32 %v1468_v27, %v1466_v15 }
 0x5c5   :  { %v1469_v23 = vadd.f32 %v1468_v27, %v1465_v10 }
 0x5ed   :  { %s1686_s0 = spop %1685 }
 0x5ee   :  { %s3236_s22 = sadd.f32 %s1686_s0, %s828_s13  ;;  %s1688_s23 = spop %1687 }
 0x5ef   :  { %s1384_s24 = smul.f32 0.00048828125, %s1688_s23 }
 0x5f1   :  { %s1411_s25 = smul.f32 0.1, %s1384_s24 }
 0x5f3   :  { %v1412_v56 = vstv %s1411_s25 }
 0x5f4   :  { %v1413_v41 = vadd.f32 %v1412_v56, %v1409_v0  ;;  %v1414_v29 = vadd.f32 %v1412_v56, %v1410_v43 }
 0x5f6   :  { %v1430_v18 = vsub.f32 %v3162_v9, %v1413_v41  ;;  %v1431_v38 = vsub.f32 %v3166_v35, %v1414_v29  ;;  %v1415_v6 = vsub.f32 %v3152_v11, %v1413_v41  ;;  %v1416_v49 = vsub.f32 %v3154_v34, %v1414_v29 }
 0x5f7   :  { %v1440_v34 = vadd.f32 %v1439_v1, %v1438_v42 }
 0x5f8   :  { %1647 = vst [vmem:[%s3324_s8 + $0x50] sm:$0xff] %v1430_v18  ;;  %1648 = vst [vmem:[%s3324_s8 + $0x58] sm:$0xff] %v1431_v38  ;;  %v1417_v19 = vmul.f32 %v1415_v6, %v1415_v6  ;;  %v1418_v8 = vmul.f32 %v1416_v49, %v1416_v49  ;;  %v1496_v18 = vpop.xlane.xlu1 %1495 }
 0x5f9   :  { %v1441_v21 = vrot.slane %v1440_v34, 1  ;;  %v1497_v38 = vrot.slane %v1496_v18, 4 }
 0x5fa   :  { %v1419_v32 = vadd.f32 %v1418_v8, %v1417_v19 }
 0x5fb   :  { %v1442_v55 = vadd.f32 %v1441_v21, %v1440_v34  ;;  %v1498_v6 = vadd.f32 %v1497_v38, %v1496_v18  ;;  %v1511_v34 = vmul.f32 %v3162_v9, %v3068_v58  ;;  %v1524_v9 = vmul.f32 %v3198_v47, %v3084_v61 }
 0x5fc   :  { %1420 = vadd.xlane.f32.xlu0 %v1419_v32 }
 0x5fd   :  { %v1499_v49 = vrot.slane %v1498_v6, 2 }
 0x685   :  { %v1421_v39 = vpop.xlane.xlu0 %1420 }
 0x686   :  { %v1422_v11 = vrot.slane %v1421_v39, 4 }
 0x688   :  { %v1423_v3 = vadd.f32 %v1422_v11, %v1421_v39  ;;  %v1507_v11 = vmul.f32 %v3169_v26, %v3066_v14 }
 0x68a   :  { %v1424_v62 = vrot.slane %v1423_v3, 2 }
 0x68c   :  { %v1425_v28 = vadd.f32 %v1424_v62, %v1423_v3  ;;  %v1508_v3 = vmul.f32 %v3172_v48, %v3066_v14  ;;  %v1512_v62 = vmul.f32 %v3166_v35, %v3068_v58  ;;  %v1523_v14 = vmul.f32 %v3194_v59, %v3084_v61 }
 0x68d   :  { %v1528_v58 = vstv %s1660_s16 }
 0x68e   :  { %v1426_v52 = vrot.slane %v1425_v28, 1  ;;  %v1514_v21 = vadd.f32 %v1512_v62, %v1508_v3 }
 0x690   :  { %v1427_v30 = vadd.f32 %v1426_v52, %v1425_v28  ;;  %v1513_v28 = vadd.f32 %v1511_v34, %v1507_v11  ;;  %v1517_v52 = vmul.f32 %v3182_v12, %v3078_v13 }
 0x692   :  { %1689 = vpush %v1427_v30  ;;  %v1518_v30 = vmul.f32 %v3186_v20, %v3078_v13  ;;  %v1519_v26 = vadd.f32 %v1517_v52, %v1513_v28 }
 0x693   :  { %1691 = vpush %v1442_v55 }
 0x694   :  { %v1520_v55 = vadd.f32 %v1518_v30, %v1514_v21  ;;  %v1525_v48 = vadd.f32 %v1523_v14, %v1519_v26 }
 0x696   :  { %v1526_v44 = vadd.f32 %v1524_v9, %v1520_v55  ;;  %v1529_v35 = vadd.f32 %v1528_v58, %v1525_v48 }
 0x698   :  { %v1530_v13 = vadd.f32 %v1528_v58, %v1526_v44 }
 0x6c3   :  { %s3264_s30 = spop %1689 }
 0x6c4   :  { %s1429_s4 = sadd.f32 %s3264_s30, %s3236_s22  ;;  %s1692_s11 = spop %1691 }
 0x6c5   :  { %s1444_s7 = smul.f32 0.00048828125, %s1692_s11  ;;  %s1808_s22 = smov [#allocation11]  }
 0x6c6   :  { %1577 = dma.smem_to_hbm %s1808_s22, 16, %s3326_s10, [#allocation12]  }
 0x6c7   :  { %s1471_s28 = smul.f32 0.1, %s1444_s7 }
 0x6c9   :  { %v1472_v4 = vstv %s1471_s28 }
 0x6ca   :  { %v1473_v36 = vadd.f32 %v1472_v4, %v1469_v23  ;;  %v1474_v25 = vadd.f32 %v1472_v4, %v1470_v31 }
 0x6cc   :  { %v1490_v24 = vsub.f32 %v3182_v12, %v1473_v36  ;;  %v1491_v0 = vsub.f32 %v3186_v20, %v1474_v25  ;;  %v1475_v2 = vsub.f32 %v3156_v16, %v1473_v36  ;;  %v1476_v43 = vsub.f32 %v3158_v46, %v1474_v25 }
 0x6cd   :  { %v1500_v46 = vadd.f32 %v1499_v49, %v1498_v6 }
 0x6ce   :  { %1654 = vst [vmem:[%s3324_s8 + $0x60] sm:$0xff] %v1490_v24  ;;  %1655 = vst [vmem:[%s3324_s8 + $0x68] sm:$0xff] %v1491_v0  ;;  %v1477_v56 = vmul.f32 %v1475_v2, %v1475_v2  ;;  %v1478_v41 = vmul.f32 %v1476_v43, %v1476_v43 }
 0x6cf   :  { %v1501_v57 = vrot.slane %v1500_v46, 1 }
 0x6d0   :  { %v1479_v29 = vadd.f32 %v1478_v41, %v1477_v56 }
 0x6d1   :  { %v1502_v39 = vadd.f32 %v1501_v57, %v1500_v46 }
 0x6d2   :  { %1480 = vadd.xlane.f32.xlu0 %v1479_v29 }
 0x75b   :  { %v1481_v19 = vpop.xlane.xlu0 %1480 }
 0x75c   :  { %v1482_v16 = vrot.slane %v1481_v19, 4 }
 0x75e   :  { %v1483_v8 = vadd.f32 %v1482_v16, %v1481_v19 }
 0x760   :  { %v1484_v32 = vrot.slane %v1483_v8, 2 }
 0x762   :  { %v1485_v63 = vadd.f32 %v1484_v32, %v1483_v8 }
 0x764   :  { %v1486_v42 = vrot.slane %v1485_v63, 1 }
 0x766   :  { %v1487_v1 = vadd.f32 %v1486_v42, %v1485_v63 }
 0x768   :  { %1693 = vpush %v1487_v1 }
 0x769   :  { %1695 = vpush %v1502_v39 }
 0x799   :  { %s1694_s6 = spop %1693 }
 0x79a   :  { %s3297_s17 = sadd.f32 %s1694_s6, %s1429_s4  ;;  %s1696_s19 = spop %1695 }
 0x79b   :  { %s1504_s18 = smul.f32 0.00048828125, %s1696_s19 }
 0x79d   :  { %s1531_s20 = smul.f32 0.1, %s1504_s18 }
 0x79f   :  { %v1532_v12 = vstv %s1531_s20 }
 0x7a0   :  { %v1533_v20 = vadd.f32 %v1532_v12, %v1529_v35  ;;  %v1534_v54 = vadd.f32 %v1532_v12, %v1530_v13 }
 0x7a2   :  { %v1550_v33 = vsub.f32 %v3194_v59, %v1533_v20  ;;  %v1551_v22 = vsub.f32 %v3198_v47, %v1534_v54  ;;  %v1535_v61 = vsub.f32 %v3176_v50, %v1533_v20  ;;  %v1536_v37 = vsub.f32 %v3178_v53, %v1534_v54 }
 0x7a4   :  { %1661 = vst [vmem:[%s3324_s8 + $0x70] sm:$0xff] %v1550_v33  ;;  %1662 = vst [vmem:[%s3324_s8 + $0x78] sm:$0xff] %v1551_v22  ;;  %v1537_v45 = vmul.f32 %v1535_v61, %v1535_v61  ;;  %v1538_v7 = vmul.f32 %v1536_v37, %v1536_v37 }
 0x7a6   :  { %v1539_v60 = vadd.f32 %v1538_v7, %v1537_v45 }
 0x7a8   :  { %1540 = vadd.xlane.f32.xlu0 %v1539_v60 }
 0x831   :  { %v1541_v50 = vpop.xlane.xlu0 %1540 }
 0x832   :  { %v1542_v53 = vrot.slane %v1541_v50, 4 }
 0x834   :  { %v1543_v59 = vadd.f32 %v1542_v53, %v1541_v50 }
 0x836   :  { %v1544_v47 = vrot.slane %v1543_v59, 2 }
 0x838   :  { %v1545_v17 = vadd.f32 %v1544_v47, %v1543_v59 }
 0x83a   :  { %v1546_v51 = vrot.slane %v1545_v17, 1 }
 0x83c   :  { %v1547_v40 = vadd.f32 %v1546_v51, %v1545_v17 }
 0x83e   :  { %1697 = vpush %v1547_v40 }
 0x86f   :  { %s1698_s25 = spop %1697 }
 0x870   :  { %s1549_s8 = sadd.f32 %s1698_s25, %s3297_s17 }
 0x872   :  { %s1554_s26 = smul.f32 6.1035156e-05, %s1549_s8 }
 0x874   :  { %1556 = sst [smem:[#allocation10]] %s1554_s26 }
 0x875   :  { %1569 = dma.smem_to_hbm %s1809_s3, 16, %s3325_s9, [#allocation3]  }
 0x876   :  { %1792 = dma.done.wait [#allocation3], 16  }
 0x877   :  { %1793 = vsyncadd [#allocation3], 4294967280 }
 0x878   :  { %1794 = dma.done.wait [#allocation12], 16  }
 0x879   :  { %1795 = vsyncadd [#allocation12], 4294967280 }
 0x87a   :  { %1586 = sfence }
 0x87b   :  { %1587 = vsyncpa [#allocation3], 1 }
 0x87c   :  { %1588 = vsyncpa [#allocation12], 1 }
 0x87d   :  { %1589 = vsyncpa [#allocation4], 1 }
 0x87e   :  { %1590 = vsyncpa [#allocation6], 1 }
 0x87f   :  { %1591 = vsyncpa [#allocation9], 1 }

</bundles_post_ra>
